<compile_context>
chip_gen: v6e
topology: v6e:2x2x1
jax: 0.10.0
libtpu: 0.0.40
codegen_flags: <defaults>
</compile_context>

<pallas_src>
import math
from functools import partial

import jax
import jax.numpy as jnp
from jax.experimental import pallas as pl
from jax.experimental.pallas import tpu as pltpu

# ---------------- config (small, deterministic, consistent with a BertModel) ----------------
VOCAB = 100
HIDDEN = 32
LAYERS = 2
HEADS = 4
HEAD_DIM = HIDDEN // HEADS
INTER = 64
MAX_POS = 16
TYPE_VOCAB = 2
NUM_CLASSES = 3
LN_EPS = 1e-12


# ---------------- fused Pallas kernel ----------------
def _layernorm(x, g, b):
    mean = jnp.mean(x, axis=-1, keepdims=True)
    var = jnp.mean((x - mean) ** 2, axis=-1, keepdims=True)
    return (x - mean) * jax.lax.rsqrt(var + LN_EPS) * g + b


def _bert_fused_kernel(
    # activations / labels
    x_ref,            # (B*S, H)  summed embeddings (pre-LayerNorm)
    mask_ref,         # (B, S)    additive attention mask (0 / -10000)
    labels_ref,       # (B, C)
    # embedding LayerNorm
    emb_ln_g_ref, emb_ln_b_ref,            # (1, H)
    # per-layer weights, stacked along a leading LAYERS axis
    wqkv_ref, bqkv_ref,                    # (L, H, 3H), (L, 1, 3H)
    wo_ref, bo_ref,                        # (L, H, H),  (L, 1, H)
    ln1_g_ref, ln1_b_ref,                  # (L, 1, H)
    w1_ref, b1_ref,                        # (L, H, I),  (L, 1, I)
    w2_ref, b2_ref,                        # (L, I, H),  (L, 1, H)
    ln2_g_ref, ln2_b_ref,                  # (L, 1, H)
    # pooler + classifier
    wp_ref, bp_ref,                        # (H, H), (1, H)
    wc_ref, bc_ref,                        # (H, C), (1, C)
    # outputs
    probs_ref,        # (B, C)
    loss_ref,         # (1, 1)
):
    B, S = mask_ref.shape
    n_layers = wqkv_ref.shape[0]
    scale = 1.0 / math.sqrt(HEAD_DIM)

    # embedding LayerNorm
    x = _layernorm(x_ref[...], emb_ln_g_ref[...], emb_ln_b_ref[...])
    add_mask = mask_ref[...]                              # (B, S)

    for l in range(n_layers):
        # --- fused QKV projection: one (B*S, 3H) matmul; pre-scale q by 1/sqrt(Dh) ---
        qkv = jnp.dot(x, wqkv_ref[l], preferred_element_type=jnp.float32) + bqkv_ref[l]
        q = qkv[:, 0:HIDDEN] * scale
        k = qkv[:, HIDDEN:2 * HIDDEN]
        v = qkv[:, 2 * HIDDEN:3 * HIDDEN]

        # --- attention: fully unrolled over (batch, head); 2D dots only, no in-kernel
        #     transposes / 4D reshapes (lowering-safe at these tiny shapes) ---
        ctx_rows = []
        for b in range(B):
            r0 = b * S
            m_b = add_mask[b:b + 1, :]                    # (1, S) -> broadcasts over query rows
            head_ctx = []
            for h in range(HEADS):
                c0 = h * HEAD_DIM
                qh = q[r0:r0 + S, c0:c0 + HEAD_DIM]       # (S, Dh)
                kh = k[r0:r0 + S, c0:c0 + HEAD_DIM]
                vh = v[r0:r0 + S, c0:c0 + HEAD_DIM]
                scores = jax.lax.dot_general(
                    qh, kh, (((1,), (1,)), ((), ())),
                    preferred_element_type=jnp.float32) + m_b
                scores = scores - jnp.max(scores, axis=-1, keepdims=True)
                p = jnp.exp(scores)
                p = p * pl.reciprocal(jnp.sum(p, axis=-1, keepdims=True), approx=True)
                head_ctx.append(jnp.dot(p, vh, preferred_element_type=jnp.float32))
            ctx_rows.append(jnp.concatenate(head_ctx, axis=-1))    # (S, H)
        ctx = jnp.concatenate(ctx_rows, axis=0)                    # (B*S, H)

        # --- output projection + residual LayerNorm ---
        attn_out = jnp.dot(ctx, wo_ref[l], preferred_element_type=jnp.float32) + bo_ref[l]
        x = _layernorm(x + attn_out, ln1_g_ref[l], ln1_b_ref[l])

        # --- FFN + residual LayerNorm ---
        inter = jnp.dot(x, w1_ref[l], preferred_element_type=jnp.float32) + b1_ref[l]
        # TODO(synk): HuggingFace BERT default is exact erf-GELU; tanh-approx GELU used here.
        inter = jax.nn.gelu(inter, approximate=True)
        ffn = jnp.dot(inter, w2_ref[l], preferred_element_type=jnp.float32) + b2_ref[l]
        x = _layernorm(x + ffn, ln2_g_ref[l], ln2_b_ref[l])

    # --- BERT pooler on the [CLS] token of every sequence -> outputs[1] ---
    cls = jnp.concatenate([x[b * S:b * S + 1, :] for b in range(B)], axis=0)   # (B, H)
    pooled = jnp.tanh(
        jnp.dot(cls, wp_ref[...], preferred_element_type=jnp.float32) + bp_ref[...])

    # --- classifier head + sigmoid ---
    logits = jnp.dot(pooled, wc_ref[...], preferred_element_type=jnp.float32) + bc_ref[...]
    probs = jax.nn.sigmoid(logits)
    probs_ref[...] = probs

    # --- BCELoss (mean reduction; log terms clamped at -100 like torch.nn.BCELoss) ---
    y = labels_ref[...]
    logp = jnp.maximum(jnp.log(probs), -100.0)
    log1mp = jnp.maximum(jnp.log(1.0 - probs), -100.0)
    loss_ref[...] = jnp.mean(-(y * logp + (1.0 - y) * log1mp), keepdims=True)


# ---------------- parameter init (deterministic, synthetic) ----------------
def init_params(key):
    keys = iter(jax.random.split(key, 64))

    def nrm(shape):
        return 0.02 * jax.random.normal(next(keys), shape, dtype=jnp.float32)

    params = {
        "word_emb": nrm((VOCAB, HIDDEN)),
        "pos_emb": nrm((MAX_POS, HIDDEN)),
        "type_emb": nrm((TYPE_VOCAB, HIDDEN)),
        "emb_ln_g": jnp.ones((HIDDEN,), jnp.float32),
        "emb_ln_b": jnp.zeros((HIDDEN,), jnp.float32),
        "layers": [],
        "wp": nrm((HIDDEN, HIDDEN)), "bp": jnp.zeros((HIDDEN,), jnp.float32),            # pooler
        "wc": nrm((HIDDEN, NUM_CLASSES)), "bc": jnp.zeros((NUM_CLASSES,), jnp.float32),  # classifier
    }
    for _ in range(LAYERS):
        params["layers"].append({
            "wq": nrm((HIDDEN, HIDDEN)), "bq": jnp.zeros((HIDDEN,), jnp.float32),
            "wk": nrm((HIDDEN, HIDDEN)), "bk": jnp.zeros((HIDDEN,), jnp.float32),
            "wv": nrm((HIDDEN, HIDDEN)), "bv": jnp.zeros((HIDDEN,), jnp.float32),
            "wo": nrm((HIDDEN, HIDDEN)), "bo": jnp.zeros((HIDDEN,), jnp.float32),
            "ln1_g": jnp.ones((HIDDEN,), jnp.float32), "ln1_b": jnp.zeros((HIDDEN,), jnp.float32),
            "w1": nrm((HIDDEN, INTER)), "b1": jnp.zeros((INTER,), jnp.float32),
            "w2": nrm((INTER, HIDDEN)), "b2": jnp.zeros((HIDDEN,), jnp.float32),
            "ln2_g": jnp.ones((HIDDEN,), jnp.float32), "ln2_b": jnp.zeros((HIDDEN,), jnp.float32),
        })
    return params


def pack_params(params):
    """One-time packing: fuse Q/K/V weights and stack per-layer tensors along a layer axis."""
    def stack(fn):
        return jnp.stack([fn(lp) for lp in params["layers"]], axis=0)

    return {
        "word_emb": params["word_emb"],
        "pos_emb": params["pos_emb"],
        "type_emb": params["type_emb"],
        "emb_ln_g": params["emb_ln_g"].reshape(1, HIDDEN),
        "emb_ln_b": params["emb_ln_b"].reshape(1, HIDDEN),
        "wqkv": stack(lambda lp: jnp.concatenate([lp["wq"], lp["wk"], lp["wv"]], axis=1)),
        "bqkv": stack(lambda lp: jnp.concatenate([lp["bq"], lp["bk"], lp["bv"]]).reshape(1, 3 * HIDDEN)),
        "wo": stack(lambda lp: lp["wo"]),
        "bo": stack(lambda lp: lp["bo"].reshape(1, HIDDEN)),
        "ln1_g": stack(lambda lp: lp["ln1_g"].reshape(1, HIDDEN)),
        "ln1_b": stack(lambda lp: lp["ln1_b"].reshape(1, HIDDEN)),
        "w1": stack(lambda lp: lp["w1"]),
        "b1": stack(lambda lp: lp["b1"].reshape(1, INTER)),
        "w2": stack(lambda lp: lp["w2"]),
        "b2": stack(lambda lp: lp["b2"].reshape(1, HIDDEN)),
        "ln2_g": stack(lambda lp: lp["ln2_g"].reshape(1, HIDDEN)),
        "ln2_b": stack(lambda lp: lp["ln2_b"].reshape(1, HIDDEN)),
        "wp": params["wp"], "bp": params["bp"].reshape(1, HIDDEN),
        "wc": params["wc"], "bc": params["bc"].reshape(1, NUM_CLASSES),
    }


# ---------------- forward pass (== BertClassifier.forward, eval mode) ----------------
def bert_classifier_forward(packed, input_ids, attention_mask=None, token_type_ids=None,
                            labels=None):
    B, S = input_ids.shape
    if attention_mask is None:
        attention_mask = jnp.ones((B, S), jnp.float32)
    if token_type_ids is None:
        token_type_ids = jnp.zeros((B, S), jnp.int32)
    position_ids = jnp.broadcast_to(jnp.arange(S, dtype=jnp.int32), (B, S))

    # embedding table gathers stay in plain JAX (glue); everything else is one fused kernel
    emb = (packed["word_emb"][input_ids]
           + packed["pos_emb"][position_ids]
           + packed["type_emb"][token_type_ids])
    x = emb.reshape(B * S, HIDDEN).astype(jnp.float32)

    # additive attention mask: 0 where attended, -10000 where masked
    add_mask = (1.0 - attention_mask.astype(jnp.float32)) * -10000.0          # (B, S)

    have_labels = labels is not None
    labels_f = (labels.astype(jnp.float32) if have_labels
                else jnp.zeros((B, NUM_CLASSES), jnp.float32))

    probs, loss = pl.pallas_call(
        _bert_fused_kernel,
        out_shape=(jax.ShapeDtypeStruct((B, NUM_CLASSES), jnp.float32),
                   jax.ShapeDtypeStruct((1, 1), jnp.float32)),
        # no grid: single invocation, all (tiny) operands resident in VMEM for the whole kernel
        compiler_params=pltpu.CompilerParams(vmem_limit_bytes=32 * 1024 * 1024),
    )(x, add_mask, labels_f,
      packed["emb_ln_g"], packed["emb_ln_b"],
      packed["wqkv"], packed["bqkv"],
      packed["wo"], packed["bo"],
      packed["ln1_g"], packed["ln1_b"],
      packed["w1"], packed["b1"],
      packed["w2"], packed["b2"],
      packed["ln2_g"], packed["ln2_b"],
      packed["wp"], packed["bp"],
      packed["wc"], packed["bc"])

    return (loss[0, 0] if have_labels else 0), probs


if __name__ == "__main__":
    key = jax.random.PRNGKey(0)
    pkey, ikey, lkey = jax.random.split(key, 3)
    params = init_params(pkey)
    packed = pack_params(params)          # one-time weight packing (fused QKV, stacked layers)

    B, S = 2, 8
    input_ids = jax.random.randint(ikey, (B, S), 0, VOCAB, dtype=jnp.int32)
    attention_mask = jnp.ones((B, S), jnp.float32)
    token_type_ids = jnp.zeros((B, S), jnp.int32)
    labels = jax.random.bernoulli(lkey, 0.5, (B, NUM_CLASSES)).astype(jnp.float32)

    fwd = jax.jit(partial(bert_classifier_forward, packed))
    loss, probs = fwd(input_ids, attention_mask, token_type_ids, labels)
    jax.block_until_ready((loss, probs))
    assert probs.shape == (B, NUM_CLASSES)
    print("KERNEL_OK")
</pallas_src>

<mosaic_0001>
module attributes {stable_mosaic.version = 11 : i64} {
  func.func @_bert_fused_kernel(%arg0: memref<16x32xf32, #tpu.memory_space<vmem>>, %arg1: memref<2x8xf32, #tpu.memory_space<vmem>>, %arg2: memref<2x3xf32, #tpu.memory_space<vmem>>, %arg3: memref<1x32xf32, #tpu.memory_space<vmem>>, %arg4: memref<1x32xf32, #tpu.memory_space<vmem>>, %arg5: memref<2x32x96xf32, #tpu.memory_space<vmem>>, %arg6: memref<2x1x96xf32, #tpu.memory_space<vmem>>, %arg7: memref<2x32x32xf32, #tpu.memory_space<vmem>>, %arg8: memref<2x1x32xf32, #tpu.memory_space<vmem>>, %arg9: memref<2x1x32xf32, #tpu.memory_space<vmem>>, %arg10: memref<2x1x32xf32, #tpu.memory_space<vmem>>, %arg11: memref<2x32x64xf32, #tpu.memory_space<vmem>>, %arg12: memref<2x1x64xf32, #tpu.memory_space<vmem>>, %arg13: memref<2x64x32xf32, #tpu.memory_space<vmem>>, %arg14: memref<2x1x32xf32, #tpu.memory_space<vmem>>, %arg15: memref<2x1x32xf32, #tpu.memory_space<vmem>>, %arg16: memref<2x1x32xf32, #tpu.memory_space<vmem>>, %arg17: memref<32x32xf32, #tpu.memory_space<vmem>>, %arg18: memref<1x32xf32, #tpu.memory_space<vmem>>, %arg19: memref<32x3xf32, #tpu.memory_space<vmem>>, %arg20: memref<1x3xf32, #tpu.memory_space<vmem>>, %arg21: memref<2x3xf32, #tpu.memory_space<vmem>>, %arg22: memref<1x1xf32, #tpu.memory_space<vmem>>) attributes {dimension_semantics = [], scalar_prefetch = 0 : i64, scratch_operands = 0 : i64, tpu.core_type = #tpu.core_type<tc>} {
    %c0 = arith.constant 0 : index
    %c0_0 = arith.constant 0 : index
    %0 = vector.load %arg0[%c0, %c0_0] : memref<16x32xf32, #tpu.memory_space<vmem>>, vector<16x32xf32>
    %c0_1 = arith.constant 0 : index
    %c0_2 = arith.constant 0 : index
    %1 = vector.load %arg3[%c0_1, %c0_2] : memref<1x32xf32, #tpu.memory_space<vmem>>, vector<1x32xf32>
    %c0_3 = arith.constant 0 : index
    %c0_4 = arith.constant 0 : index
    %2 = vector.load %arg4[%c0_3, %c0_4] : memref<1x32xf32, #tpu.memory_space<vmem>>, vector<1x32xf32>
    %cst = arith.constant dense<0.000000e+00> : vector<16xf32>
    %3 = vector.multi_reduction <add>, %0, %cst [1] : vector<16x32xf32> to vector<16xf32>
    %4 = vector.shape_cast %3 : vector<16xf32> to vector<16x1xf32>
    %cst_5 = arith.constant 3.200000e+01 : f32
    %5 = vector.broadcast %cst_5 : f32 to vector<16x1xf32>
    %6 = arith.divf %4, %5 : vector<16x1xf32>
    %7 = vector.broadcast %6 : vector<16x1xf32> to vector<16x32xf32>
    %8 = arith.subf %0, %7 : vector<16x32xf32>
    %9 = arith.mulf %8, %8 : vector<16x32xf32>
    %cst_6 = arith.constant dense<0.000000e+00> : vector<16xf32>
    %10 = vector.multi_reduction <add>, %9, %cst_6 [1] : vector<16x32xf32> to vector<16xf32>
    %11 = vector.shape_cast %10 : vector<16xf32> to vector<16x1xf32>
    %cst_7 = arith.constant 3.200000e+01 : f32
    %12 = vector.broadcast %cst_7 : f32 to vector<16x1xf32>
    %13 = arith.divf %11, %12 : vector<16x1xf32>
    %14 = vector.broadcast %6 : vector<16x1xf32> to vector<16x32xf32>
    %15 = arith.subf %0, %14 : vector<16x32xf32>
    %cst_8 = arith.constant 9.99999996E-13 : f32
    %16 = vector.broadcast %cst_8 : f32 to vector<16x1xf32>
    %17 = arith.addf %13, %16 : vector<16x1xf32>
    %18 = math.rsqrt %17 : vector<16x1xf32>
    %19 = vector.broadcast %18 : vector<16x1xf32> to vector<16x32xf32>
    %20 = arith.mulf %15, %19 : vector<16x32xf32>
    %21 = vector.broadcast %1 : vector<1x32xf32> to vector<16x32xf32>
    %22 = arith.mulf %20, %21 : vector<16x32xf32>
    %23 = vector.broadcast %2 : vector<1x32xf32> to vector<16x32xf32>
    %24 = arith.addf %22, %23 : vector<16x32xf32>
    %c0_9 = arith.constant 0 : index
    %c0_10 = arith.constant 0 : index
    %25 = vector.load %arg1[%c0_9, %c0_10] : memref<2x8xf32, #tpu.memory_space<vmem>>, vector<2x8xf32>
    %c0_11 = arith.constant 0 : index
    %c0_12 = arith.constant 0 : index
    %c0_13 = arith.constant 0 : index
    %26 = vector.load %arg5[%c0_11, %c0_12, %c0_13] : memref<2x32x96xf32, #tpu.memory_space<vmem>>, vector<1x32x96xf32>
    %27 = vector.shape_cast %26 : vector<1x32x96xf32> to vector<32x96xf32>
    %cst_14 = arith.constant dense<0.000000e+00> : vector<16x96xf32>
    %28 = tpu.matmul %24, %27, %cst_14 {dimension_numbers = #tpu.dot_dimension_numbers<[1], [0], [0], [1], [0, 0, 1, 1], [], []>} : vector<16x32xf32>, vector<32x96xf32>, vector<16x96xf32> -> vector<16x96xf32>
    %c0_15 = arith.constant 0 : index
    %c0_16 = arith.constant 0 : index
    %c0_17 = arith.constant 0 : index
    %29 = vector.load %arg6[%c0_15, %c0_16, %c0_17] : memref<2x1x96xf32, #tpu.memory_space<vmem>>, vector<1x1x96xf32>
    %30 = vector.shape_cast %29 : vector<1x1x96xf32> to vector<1x96xf32>
    %31 = vector.broadcast %30 : vector<1x96xf32> to vector<16x96xf32>
    %32 = arith.addf %28, %31 : vector<16x96xf32>
    %33 = vector.extract_strided_slice %32 {offsets = [0, 0], sizes = [16, 32], strides = [1, 1]} : vector<16x96xf32> to vector<16x32xf32>
    %cst_18 = arith.constant 0.353553385 : f32
    %34 = vector.broadcast %cst_18 : f32 to vector<16x32xf32>
    %35 = arith.mulf %33, %34 : vector<16x32xf32>
    %36 = vector.extract_strided_slice %32 {offsets = [0, 32], sizes = [16, 32], strides = [1, 1]} : vector<16x96xf32> to vector<16x32xf32>
    %37 = vector.extract_strided_slice %32 {offsets = [0, 64], sizes = [16, 32], strides = [1, 1]} : vector<16x96xf32> to vector<16x32xf32>
    %38 = vector.extract_strided_slice %25 {offsets = [0, 0], sizes = [1, 8], strides = [1, 1]} : vector<2x8xf32> to vector<1x8xf32>
    %39 = vector.extract_strided_slice %35 {offsets = [0, 0], sizes = [8, 8], strides = [1, 1]} : vector<16x32xf32> to vector<8x8xf32>
    %40 = vector.extract_strided_slice %36 {offsets = [0, 0], sizes = [8, 8], strides = [1, 1]} : vector<16x32xf32> to vector<8x8xf32>
    %41 = vector.extract_strided_slice %37 {offsets = [0, 0], sizes = [8, 8], strides = [1, 1]} : vector<16x32xf32> to vector<8x8xf32>
    %cst_19 = arith.constant dense<0.000000e+00> : vector<8x8xf32>
    %42 = tpu.matmul %39, %40, %cst_19 {dimension_numbers = #tpu.dot_dimension_numbers<[1], [1], [0], [0], [0, 0, 1, 0], [], []>} : vector<8x8xf32>, vector<8x8xf32>, vector<8x8xf32> -> vector<8x8xf32>
    %43 = vector.broadcast %38 : vector<1x8xf32> to vector<8x8xf32>
    %44 = arith.addf %42, %43 : vector<8x8xf32>
    %cst_20 = arith.constant dense<0xFF800000> : vector<8xf32>
    %45 = vector.multi_reduction <maximumf>, %44, %cst_20 [1] : vector<8x8xf32> to vector<8xf32>
    %46 = vector.shape_cast %45 : vector<8xf32> to vector<8x1xf32>
    %47 = vector.broadcast %46 : vector<8x1xf32> to vector<8x8xf32>
    %48 = arith.subf %44, %47 : vector<8x8xf32>
    %49 = math.exp %48 : vector<8x8xf32>
    %cst_21 = arith.constant dense<0.000000e+00> : vector<8xf32>
    %50 = vector.multi_reduction <add>, %49, %cst_21 [1] : vector<8x8xf32> to vector<8xf32>
    %51 = vector.shape_cast %50 : vector<8xf32> to vector<8x1xf32>
    %52 = tpu.reciprocal %51 {approx = true} : vector<8x1xf32> -> vector<8x1xf32>
    %53 = vector.broadcast %52 : vector<8x1xf32> to vector<8x8xf32>
    %54 = arith.mulf %49, %53 : vector<8x8xf32>
    %cst_22 = arith.constant dense<0.000000e+00> : vector<8x8xf32>
    %55 = tpu.matmul %54, %41, %cst_22 {dimension_numbers = #tpu.dot_dimension_numbers<[1], [0], [0], [1], [0, 0, 1, 1], [], []>} : vector<8x8xf32>, vector<8x8xf32>, vector<8x8xf32> -> vector<8x8xf32>
    %56 = vector.extract_strided_slice %35 {offsets = [0, 8], sizes = [8, 8], strides = [1, 1]} : vector<16x32xf32> to vector<8x8xf32>
    %57 = vector.extract_strided_slice %36 {offsets = [0, 8], sizes = [8, 8], strides = [1, 1]} : vector<16x32xf32> to vector<8x8xf32>
    %58 = vector.extract_strided_slice %37 {offsets = [0, 8], sizes = [8, 8], strides = [1, 1]} : vector<16x32xf32> to vector<8x8xf32>
    %cst_23 = arith.constant dense<0.000000e+00> : vector<8x8xf32>
    %59 = tpu.matmul %56, %57, %cst_23 {dimension_numbers = #tpu.dot_dimension_numbers<[1], [1], [0], [0], [0, 0, 1, 0], [], []>} : vector<8x8xf32>, vector<8x8xf32>, vector<8x8xf32> -> vector<8x8xf32>
    %60 = vector.broadcast %38 : vector<1x8xf32> to vector<8x8xf32>
    %61 = arith.addf %59, %60 : vector<8x8xf32>
    %cst_24 = arith.constant dense<0xFF800000> : vector<8xf32>
    %62 = vector.multi_reduction <maximumf>, %61, %cst_24 [1] : vector<8x8xf32> to vector<8xf32>
    %63 = vector.shape_cast %62 : vector<8xf32> to vector<8x1xf32>
    %64 = vector.broadcast %63 : vector<8x1xf32> to vector<8x8xf32>
    %65 = arith.subf %61, %64 : vector<8x8xf32>
    %66 = math.exp %65 : vector<8x8xf32>
    %cst_25 = arith.constant dense<0.000000e+00> : vector<8xf32>
    %67 = vector.multi_reduction <add>, %66, %cst_25 [1] : vector<8x8xf32> to vector<8xf32>
    %68 = vector.shape_cast %67 : vector<8xf32> to vector<8x1xf32>
    %69 = tpu.reciprocal %68 {approx = true} : vector<8x1xf32> -> vector<8x1xf32>
    %70 = vector.broadcast %69 : vector<8x1xf32> to vector<8x8xf32>
    %71 = arith.mulf %66, %70 : vector<8x8xf32>
    %cst_26 = arith.constant dense<0.000000e+00> : vector<8x8xf32>
    %72 = tpu.matmul %71, %58, %cst_26 {dimension_numbers = #tpu.dot_dimension_numbers<[1], [0], [0], [1], [0, 0, 1, 1], [], []>} : vector<8x8xf32>, vector<8x8xf32>, vector<8x8xf32> -> vector<8x8xf32>
    %73 = vector.extract_strided_slice %35 {offsets = [0, 16], sizes = [8, 8], strides = [1, 1]} : vector<16x32xf32> to vector<8x8xf32>
    %74 = vector.extract_strided_slice %36 {offsets = [0, 16], sizes = [8, 8], strides = [1, 1]} : vector<16x32xf32> to vector<8x8xf32>
    %75 = vector.extract_strided_slice %37 {offsets = [0, 16], sizes = [8, 8], strides = [1, 1]} : vector<16x32xf32> to vector<8x8xf32>
    %cst_27 = arith.constant dense<0.000000e+00> : vector<8x8xf32>
    %76 = tpu.matmul %73, %74, %cst_27 {dimension_numbers = #tpu.dot_dimension_numbers<[1], [1], [0], [0], [0, 0, 1, 0], [], []>} : vector<8x8xf32>, vector<8x8xf32>, vector<8x8xf32> -> vector<8x8xf32>
    %77 = vector.broadcast %38 : vector<1x8xf32> to vector<8x8xf32>
    %78 = arith.addf %76, %77 : vector<8x8xf32>
    %cst_28 = arith.constant dense<0xFF800000> : vector<8xf32>
    %79 = vector.multi_reduction <maximumf>, %78, %cst_28 [1] : vector<8x8xf32> to vector<8xf32>
    %80 = vector.shape_cast %79 : vector<8xf32> to vector<8x1xf32>
    %81 = vector.broadcast %80 : vector<8x1xf32> to vector<8x8xf32>
    %82 = arith.subf %78, %81 : vector<8x8xf32>
    %83 = math.exp %82 : vector<8x8xf32>
    %cst_29 = arith.constant dense<0.000000e+00> : vector<8xf32>
    %84 = vector.multi_reduction <add>, %83, %cst_29 [1] : vector<8x8xf32> to vector<8xf32>
    %85 = vector.shape_cast %84 : vector<8xf32> to vector<8x1xf32>
    %86 = tpu.reciprocal %85 {approx = true} : vector<8x1xf32> -> vector<8x1xf32>
    %87 = vector.broadcast %86 : vector<8x1xf32> to vector<8x8xf32>
    %88 = arith.mulf %83, %87 : vector<8x8xf32>
    %cst_30 = arith.constant dense<0.000000e+00> : vector<8x8xf32>
    %89 = tpu.matmul %88, %75, %cst_30 {dimension_numbers = #tpu.dot_dimension_numbers<[1], [0], [0], [1], [0, 0, 1, 1], [], []>} : vector<8x8xf32>, vector<8x8xf32>, vector<8x8xf32> -> vector<8x8xf32>
    %90 = vector.extract_strided_slice %35 {offsets = [0, 24], sizes = [8, 8], strides = [1, 1]} : vector<16x32xf32> to vector<8x8xf32>
    %91 = vector.extract_strided_slice %36 {offsets = [0, 24], sizes = [8, 8], strides = [1, 1]} : vector<16x32xf32> to vector<8x8xf32>
    %92 = vector.extract_strided_slice %37 {offsets = [0, 24], sizes = [8, 8], strides = [1, 1]} : vector<16x32xf32> to vector<8x8xf32>
    %cst_31 = arith.constant dense<0.000000e+00> : vector<8x8xf32>
    %93 = tpu.matmul %90, %91, %cst_31 {dimension_numbers = #tpu.dot_dimension_numbers<[1], [1], [0], [0], [0, 0, 1, 0], [], []>} : vector<8x8xf32>, vector<8x8xf32>, vector<8x8xf32> -> vector<8x8xf32>
    %94 = vector.broadcast %38 : vector<1x8xf32> to vector<8x8xf32>
    %95 = arith.addf %93, %94 : vector<8x8xf32>
    %cst_32 = arith.constant dense<0xFF800000> : vector<8xf32>
    %96 = vector.multi_reduction <maximumf>, %95, %cst_32 [1] : vector<8x8xf32> to vector<8xf32>
    %97 = vector.shape_cast %96 : vector<8xf32> to vector<8x1xf32>
    %98 = vector.broadcast %97 : vector<8x1xf32> to vector<8x8xf32>
    %99 = arith.subf %95, %98 : vector<8x8xf32>
    %100 = math.exp %99 : vector<8x8xf32>
    %cst_33 = arith.constant dense<0.000000e+00> : vector<8xf32>
    %101 = vector.multi_reduction <add>, %100, %cst_33 [1] : vector<8x8xf32> to vector<8xf32>
    %102 = vector.shape_cast %101 : vector<8xf32> to vector<8x1xf32>
    %103 = tpu.reciprocal %102 {approx = true} : vector<8x1xf32> -> vector<8x1xf32>
    %104 = vector.broadcast %103 : vector<8x1xf32> to vector<8x8xf32>
    %105 = arith.mulf %100, %104 : vector<8x8xf32>
    %cst_34 = arith.constant dense<0.000000e+00> : vector<8x8xf32>
    %106 = tpu.matmul %105, %92, %cst_34 {dimension_numbers = #tpu.dot_dimension_numbers<[1], [0], [0], [1], [0, 0, 1, 1], [], []>} : vector<8x8xf32>, vector<8x8xf32>, vector<8x8xf32> -> vector<8x8xf32>
    %107 = tpu.concatenate %55, %72, %89, %106 in 1 : vector<8x8xf32>, vector<8x8xf32>, vector<8x8xf32>, vector<8x8xf32> -> vector<8x32xf32>
    %108 = vector.extract_strided_slice %25 {offsets = [1, 0], sizes = [1, 8], strides = [1, 1]} : vector<2x8xf32> to vector<1x8xf32>
    %109 = vector.extract_strided_slice %35 {offsets = [8, 0], sizes = [8, 8], strides = [1, 1]} : vector<16x32xf32> to vector<8x8xf32>
    %110 = vector.extract_strided_slice %36 {offsets = [8, 0], sizes = [8, 8], strides = [1, 1]} : vector<16x32xf32> to vector<8x8xf32>
    %111 = vector.extract_strided_slice %37 {offsets = [8, 0], sizes = [8, 8], strides = [1, 1]} : vector<16x32xf32> to vector<8x8xf32>
    %cst_35 = arith.constant dense<0.000000e+00> : vector<8x8xf32>
    %112 = tpu.matmul %109, %110, %cst_35 {dimension_numbers = #tpu.dot_dimension_numbers<[1], [1], [0], [0], [0, 0, 1, 0], [], []>} : vector<8x8xf32>, vector<8x8xf32>, vector<8x8xf32> -> vector<8x8xf32>
    %113 = vector.broadcast %108 : vector<1x8xf32> to vector<8x8xf32>
    %114 = arith.addf %112, %113 : vector<8x8xf32>
    %cst_36 = arith.constant dense<0xFF800000> : vector<8xf32>
    %115 = vector.multi_reduction <maximumf>, %114, %cst_36 [1] : vector<8x8xf32> to vector<8xf32>
    %116 = vector.shape_cast %115 : vector<8xf32> to vector<8x1xf32>
    %117 = vector.broadcast %116 : vector<8x1xf32> to vector<8x8xf32>
    %118 = arith.subf %114, %117 : vector<8x8xf32>
    %119 = math.exp %118 : vector<8x8xf32>
    %cst_37 = arith.constant dense<0.000000e+00> : vector<8xf32>
    %120 = vector.multi_reduction <add>, %119, %cst_37 [1] : vector<8x8xf32> to vector<8xf32>
    %121 = vector.shape_cast %120 : vector<8xf32> to vector<8x1xf32>
    %122 = tpu.reciprocal %121 {approx = true} : vector<8x1xf32> -> vector<8x1xf32>
    %123 = vector.broadcast %122 : vector<8x1xf32> to vector<8x8xf32>
    %124 = arith.mulf %119, %123 : vector<8x8xf32>
    %cst_38 = arith.constant dense<0.000000e+00> : vector<8x8xf32>
    %125 = tpu.matmul %124, %111, %cst_38 {dimension_numbers = #tpu.dot_dimension_numbers<[1], [0], [0], [1], [0, 0, 1, 1], [], []>} : vector<8x8xf32>, vector<8x8xf32>, vector<8x8xf32> -> vector<8x8xf32>
    %126 = vector.extract_strided_slice %35 {offsets = [8, 8], sizes = [8, 8], strides = [1, 1]} : vector<16x32xf32> to vector<8x8xf32>
    %127 = vector.extract_strided_slice %36 {offsets = [8, 8], sizes = [8, 8], strides = [1, 1]} : vector<16x32xf32> to vector<8x8xf32>
    %128 = vector.extract_strided_slice %37 {offsets = [8, 8], sizes = [8, 8], strides = [1, 1]} : vector<16x32xf32> to vector<8x8xf32>
    %cst_39 = arith.constant dense<0.000000e+00> : vector<8x8xf32>
    %129 = tpu.matmul %126, %127, %cst_39 {dimension_numbers = #tpu.dot_dimension_numbers<[1], [1], [0], [0], [0, 0, 1, 0], [], []>} : vector<8x8xf32>, vector<8x8xf32>, vector<8x8xf32> -> vector<8x8xf32>
    %130 = vector.broadcast %108 : vector<1x8xf32> to vector<8x8xf32>
    %131 = arith.addf %129, %130 : vector<8x8xf32>
    %cst_40 = arith.constant dense<0xFF800000> : vector<8xf32>
    %132 = vector.multi_reduction <maximumf>, %131, %cst_40 [1] : vector<8x8xf32> to vector<8xf32>
    %133 = vector.shape_cast %132 : vector<8xf32> to vector<8x1xf32>
    %134 = vector.broadcast %133 : vector<8x1xf32> to vector<8x8xf32>
    %135 = arith.subf %131, %134 : vector<8x8xf32>
    %136 = math.exp %135 : vector<8x8xf32>
    %cst_41 = arith.constant dense<0.000000e+00> : vector<8xf32>
    %137 = vector.multi_reduction <add>, %136, %cst_41 [1] : vector<8x8xf32> to vector<8xf32>
    %138 = vector.shape_cast %137 : vector<8xf32> to vector<8x1xf32>
    %139 = tpu.reciprocal %138 {approx = true} : vector<8x1xf32> -> vector<8x1xf32>
    %140 = vector.broadcast %139 : vector<8x1xf32> to vector<8x8xf32>
    %141 = arith.mulf %136, %140 : vector<8x8xf32>
    %cst_42 = arith.constant dense<0.000000e+00> : vector<8x8xf32>
    %142 = tpu.matmul %141, %128, %cst_42 {dimension_numbers = #tpu.dot_dimension_numbers<[1], [0], [0], [1], [0, 0, 1, 1], [], []>} : vector<8x8xf32>, vector<8x8xf32>, vector<8x8xf32> -> vector<8x8xf32>
    %143 = vector.extract_strided_slice %35 {offsets = [8, 16], sizes = [8, 8], strides = [1, 1]} : vector<16x32xf32> to vector<8x8xf32>
    %144 = vector.extract_strided_slice %36 {offsets = [8, 16], sizes = [8, 8], strides = [1, 1]} : vector<16x32xf32> to vector<8x8xf32>
    %145 = vector.extract_strided_slice %37 {offsets = [8, 16], sizes = [8, 8], strides = [1, 1]} : vector<16x32xf32> to vector<8x8xf32>
    %cst_43 = arith.constant dense<0.000000e+00> : vector<8x8xf32>
    %146 = tpu.matmul %143, %144, %cst_43 {dimension_numbers = #tpu.dot_dimension_numbers<[1], [1], [0], [0], [0, 0, 1, 0], [], []>} : vector<8x8xf32>, vector<8x8xf32>, vector<8x8xf32> -> vector<8x8xf32>
    %147 = vector.broadcast %108 : vector<1x8xf32> to vector<8x8xf32>
    %148 = arith.addf %146, %147 : vector<8x8xf32>
    %cst_44 = arith.constant dense<0xFF800000> : vector<8xf32>
    %149 = vector.multi_reduction <maximumf>, %148, %cst_44 [1] : vector<8x8xf32> to vector<8xf32>
    %150 = vector.shape_cast %149 : vector<8xf32> to vector<8x1xf32>
    %151 = vector.broadcast %150 : vector<8x1xf32> to vector<8x8xf32>
    %152 = arith.subf %148, %151 : vector<8x8xf32>
    %153 = math.exp %152 : vector<8x8xf32>
    %cst_45 = arith.constant dense<0.000000e+00> : vector<8xf32>
    %154 = vector.multi_reduction <add>, %153, %cst_45 [1] : vector<8x8xf32> to vector<8xf32>
    %155 = vector.shape_cast %154 : vector<8xf32> to vector<8x1xf32>
    %156 = tpu.reciprocal %155 {approx = true} : vector<8x1xf32> -> vector<8x1xf32>
    %157 = vector.broadcast %156 : vector<8x1xf32> to vector<8x8xf32>
    %158 = arith.mulf %153, %157 : vector<8x8xf32>
    %cst_46 = arith.constant dense<0.000000e+00> : vector<8x8xf32>
    %159 = tpu.matmul %158, %145, %cst_46 {dimension_numbers = #tpu.dot_dimension_numbers<[1], [0], [0], [1], [0, 0, 1, 1], [], []>} : vector<8x8xf32>, vector<8x8xf32>, vector<8x8xf32> -> vector<8x8xf32>
    %160 = vector.extract_strided_slice %35 {offsets = [8, 24], sizes = [8, 8], strides = [1, 1]} : vector<16x32xf32> to vector<8x8xf32>
    %161 = vector.extract_strided_slice %36 {offsets = [8, 24], sizes = [8, 8], strides = [1, 1]} : vector<16x32xf32> to vector<8x8xf32>
    %162 = vector.extract_strided_slice %37 {offsets = [8, 24], sizes = [8, 8], strides = [1, 1]} : vector<16x32xf32> to vector<8x8xf32>
    %cst_47 = arith.constant dense<0.000000e+00> : vector<8x8xf32>
    %163 = tpu.matmul %160, %161, %cst_47 {dimension_numbers = #tpu.dot_dimension_numbers<[1], [1], [0], [0], [0, 0, 1, 0], [], []>} : vector<8x8xf32>, vector<8x8xf32>, vector<8x8xf32> -> vector<8x8xf32>
    %164 = vector.broadcast %108 : vector<1x8xf32> to vector<8x8xf32>
    %165 = arith.addf %163, %164 : vector<8x8xf32>
    %cst_48 = arith.constant dense<0xFF800000> : vector<8xf32>
    %166 = vector.multi_reduction <maximumf>, %165, %cst_48 [1] : vector<8x8xf32> to vector<8xf32>
    %167 = vector.shape_cast %166 : vector<8xf32> to vector<8x1xf32>
    %168 = vector.broadcast %167 : vector<8x1xf32> to vector<8x8xf32>
    %169 = arith.subf %165, %168 : vector<8x8xf32>
    %170 = math.exp %169 : vector<8x8xf32>
    %cst_49 = arith.constant dense<0.000000e+00> : vector<8xf32>
    %171 = vector.multi_reduction <add>, %170, %cst_49 [1] : vector<8x8xf32> to vector<8xf32>
    %172 = vector.shape_cast %171 : vector<8xf32> to vector<8x1xf32>
    %173 = tpu.reciprocal %172 {approx = true} : vector<8x1xf32> -> vector<8x1xf32>
    %174 = vector.broadcast %173 : vector<8x1xf32> to vector<8x8xf32>
    %175 = arith.mulf %170, %174 : vector<8x8xf32>
    %cst_50 = arith.constant dense<0.000000e+00> : vector<8x8xf32>
    %176 = tpu.matmul %175, %162, %cst_50 {dimension_numbers = #tpu.dot_dimension_numbers<[1], [0], [0], [1], [0, 0, 1, 1], [], []>} : vector<8x8xf32>, vector<8x8xf32>, vector<8x8xf32> -> vector<8x8xf32>
    %177 = tpu.concatenate %125, %142, %159, %176 in 1 : vector<8x8xf32>, vector<8x8xf32>, vector<8x8xf32>, vector<8x8xf32> -> vector<8x32xf32>
    %178 = tpu.concatenate %107, %177 in 0 : vector<8x32xf32>, vector<8x32xf32> -> vector<16x32xf32>
    %c0_51 = arith.constant 0 : index
    %c0_52 = arith.constant 0 : index
    %c0_53 = arith.constant 0 : index
    %179 = vector.load %arg7[%c0_51, %c0_52, %c0_53] : memref<2x32x32xf32, #tpu.memory_space<vmem>>, vector<1x32x32xf32>
    %180 = vector.shape_cast %179 : vector<1x32x32xf32> to vector<32x32xf32>
    %cst_54 = arith.constant dense<0.000000e+00> : vector<16x32xf32>
    %181 = tpu.matmul %178, %180, %cst_54 {dimension_numbers = #tpu.dot_dimension_numbers<[1], [0], [0], [1], [0, 0, 1, 1], [], []>} : vector<16x32xf32>, vector<32x32xf32>, vector<16x32xf32> -> vector<16x32xf32>
    %c0_55 = arith.constant 0 : index
    %c0_56 = arith.constant 0 : index
    %c0_57 = arith.constant 0 : index
    %182 = vector.load %arg8[%c0_55, %c0_56, %c0_57] : memref<2x1x32xf32, #tpu.memory_space<vmem>>, vector<1x1x32xf32>
    %183 = vector.shape_cast %182 : vector<1x1x32xf32> to vector<1x32xf32>
    %184 = vector.broadcast %183 : vector<1x32xf32> to vector<16x32xf32>
    %185 = arith.addf %181, %184 : vector<16x32xf32>
    %186 = arith.addf %24, %185 : vector<16x32xf32>
    %c0_58 = arith.constant 0 : index
    %c0_59 = arith.constant 0 : index
    %c0_60 = arith.constant 0 : index
    %187 = vector.load %arg9[%c0_58, %c0_59, %c0_60] : memref<2x1x32xf32, #tpu.memory_space<vmem>>, vector<1x1x32xf32>
    %188 = vector.shape_cast %187 : vector<1x1x32xf32> to vector<1x32xf32>
    %c0_61 = arith.constant 0 : index
    %c0_62 = arith.constant 0 : index
    %c0_63 = arith.constant 0 : index
    %189 = vector.load %arg10[%c0_61, %c0_62, %c0_63] : memref<2x1x32xf32, #tpu.memory_space<vmem>>, vector<1x1x32xf32>
    %190 = vector.shape_cast %189 : vector<1x1x32xf32> to vector<1x32xf32>
    %cst_64 = arith.constant dense<0.000000e+00> : vector<16xf32>
    %191 = vector.multi_reduction <add>, %186, %cst_64 [1] : vector<16x32xf32> to vector<16xf32>
    %192 = vector.shape_cast %191 : vector<16xf32> to vector<16x1xf32>
    %cst_65 = arith.constant 3.200000e+01 : f32
    %193 = vector.broadcast %cst_65 : f32 to vector<16x1xf32>
    %194 = arith.divf %192, %193 : vector<16x1xf32>
    %195 = vector.broadcast %194 : vector<16x1xf32> to vector<16x32xf32>
    %196 = arith.subf %186, %195 : vector<16x32xf32>
    %197 = arith.mulf %196, %196 : vector<16x32xf32>
    %cst_66 = arith.constant dense<0.000000e+00> : vector<16xf32>
    %198 = vector.multi_reduction <add>, %197, %cst_66 [1] : vector<16x32xf32> to vector<16xf32>
    %199 = vector.shape_cast %198 : vector<16xf32> to vector<16x1xf32>
    %cst_67 = arith.constant 3.200000e+01 : f32
    %200 = vector.broadcast %cst_67 : f32 to vector<16x1xf32>
    %201 = arith.divf %199, %200 : vector<16x1xf32>
    %202 = vector.broadcast %194 : vector<16x1xf32> to vector<16x32xf32>
    %203 = arith.subf %186, %202 : vector<16x32xf32>
    %cst_68 = arith.constant 9.99999996E-13 : f32
    %204 = vector.broadcast %cst_68 : f32 to vector<16x1xf32>
    %205 = arith.addf %201, %204 : vector<16x1xf32>
    %206 = math.rsqrt %205 : vector<16x1xf32>
    %207 = vector.broadcast %206 : vector<16x1xf32> to vector<16x32xf32>
    %208 = arith.mulf %203, %207 : vector<16x32xf32>
    %209 = vector.broadcast %188 : vector<1x32xf32> to vector<16x32xf32>
    %210 = arith.mulf %208, %209 : vector<16x32xf32>
    %211 = vector.broadcast %190 : vector<1x32xf32> to vector<16x32xf32>
    %212 = arith.addf %210, %211 : vector<16x32xf32>
    %c0_69 = arith.constant 0 : index
    %c0_70 = arith.constant 0 : index
    %c0_71 = arith.constant 0 : index
    %213 = vector.load %arg11[%c0_69, %c0_70, %c0_71] : memref<2x32x64xf32, #tpu.memory_space<vmem>>, vector<1x32x64xf32>
    %214 = vector.shape_cast %213 : vector<1x32x64xf32> to vector<32x64xf32>
    %cst_72 = arith.constant dense<0.000000e+00> : vector<16x64xf32>
    %215 = tpu.matmul %212, %214, %cst_72 {dimension_numbers = #tpu.dot_dimension_numbers<[1], [0], [0], [1], [0, 0, 1, 1], [], []>} : vector<16x32xf32>, vector<32x64xf32>, vector<16x64xf32> -> vector<16x64xf32>
    %c0_73 = arith.constant 0 : index
    %c0_74 = arith.constant 0 : index
    %c0_75 = arith.constant 0 : index
    %216 = vector.load %arg12[%c0_73, %c0_74, %c0_75] : memref<2x1x64xf32, #tpu.memory_space<vmem>>, vector<1x1x64xf32>
    %217 = vector.shape_cast %216 : vector<1x1x64xf32> to vector<1x64xf32>
    %218 = vector.broadcast %217 : vector<1x64xf32> to vector<16x64xf32>
    %219 = arith.addf %215, %218 : vector<16x64xf32>
    %220 = arith.mulf %219, %219 : vector<16x64xf32>
    %221 = arith.mulf %219, %220 : vector<16x64xf32>
    %cst_76 = arith.constant 4.471500e-02 : f32
    %222 = vector.broadcast %cst_76 : f32 to vector<16x64xf32>
    %223 = arith.mulf %222, %221 : vector<16x64xf32>
    %224 = arith.addf %219, %223 : vector<16x64xf32>
    %cst_77 = arith.constant 0.797884583 : f32
    %225 = vector.broadcast %cst_77 : f32 to vector<16x64xf32>
    %226 = arith.mulf %225, %224 : vector<16x64xf32>
    %227 = math.tanh %226 : vector<16x64xf32>
    %cst_78 = arith.constant 1.000000e+00 : f32
    %228 = vector.broadcast %cst_78 : f32 to vector<16x64xf32>
    %229 = arith.addf %228, %227 : vector<16x64xf32>
    %cst_79 = arith.constant 5.000000e-01 : f32
    %230 = vector.broadcast %cst_79 : f32 to vector<16x64xf32>
    %231 = arith.mulf %230, %229 : vector<16x64xf32>
    %232 = arith.mulf %219, %231 : vector<16x64xf32>
    %c0_80 = arith.constant 0 : index
    %c0_81 = arith.constant 0 : index
    %c0_82 = arith.constant 0 : index
    %233 = vector.load %arg13[%c0_80, %c0_81, %c0_82] : memref<2x64x32xf32, #tpu.memory_space<vmem>>, vector<1x64x32xf32>
    %234 = vector.shape_cast %233 : vector<1x64x32xf32> to vector<64x32xf32>
    %cst_83 = arith.constant dense<0.000000e+00> : vector<16x32xf32>
    %235 = tpu.matmul %232, %234, %cst_83 {dimension_numbers = #tpu.dot_dimension_numbers<[1], [0], [0], [1], [0, 0, 1, 1], [], []>} : vector<16x64xf32>, vector<64x32xf32>, vector<16x32xf32> -> vector<16x32xf32>
    %c0_84 = arith.constant 0 : index
    %c0_85 = arith.constant 0 : index
    %c0_86 = arith.constant 0 : index
    %236 = vector.load %arg14[%c0_84, %c0_85, %c0_86] : memref<2x1x32xf32, #tpu.memory_space<vmem>>, vector<1x1x32xf32>
    %237 = vector.shape_cast %236 : vector<1x1x32xf32> to vector<1x32xf32>
    %238 = vector.broadcast %237 : vector<1x32xf32> to vector<16x32xf32>
    %239 = arith.addf %235, %238 : vector<16x32xf32>
    %240 = arith.addf %212, %239 : vector<16x32xf32>
    %c0_87 = arith.constant 0 : index
    %c0_88 = arith.constant 0 : index
    %c0_89 = arith.constant 0 : index
    %241 = vector.load %arg15[%c0_87, %c0_88, %c0_89] : memref<2x1x32xf32, #tpu.memory_space<vmem>>, vector<1x1x32xf32>
    %242 = vector.shape_cast %241 : vector<1x1x32xf32> to vector<1x32xf32>
    %c0_90 = arith.constant 0 : index
    %c0_91 = arith.constant 0 : index
    %c0_92 = arith.constant 0 : index
    %243 = vector.load %arg16[%c0_90, %c0_91, %c0_92] : memref<2x1x32xf32, #tpu.memory_space<vmem>>, vector<1x1x32xf32>
    %244 = vector.shape_cast %243 : vector<1x1x32xf32> to vector<1x32xf32>
    %cst_93 = arith.constant dense<0.000000e+00> : vector<16xf32>
    %245 = vector.multi_reduction <add>, %240, %cst_93 [1] : vector<16x32xf32> to vector<16xf32>
    %246 = vector.shape_cast %245 : vector<16xf32> to vector<16x1xf32>
    %cst_94 = arith.constant 3.200000e+01 : f32
    %247 = vector.broadcast %cst_94 : f32 to vector<16x1xf32>
    %248 = arith.divf %246, %247 : vector<16x1xf32>
    %249 = vector.broadcast %248 : vector<16x1xf32> to vector<16x32xf32>
    %250 = arith.subf %240, %249 : vector<16x32xf32>
    %251 = arith.mulf %250, %250 : vector<16x32xf32>
    %cst_95 = arith.constant dense<0.000000e+00> : vector<16xf32>
    %252 = vector.multi_reduction <add>, %251, %cst_95 [1] : vector<16x32xf32> to vector<16xf32>
    %253 = vector.shape_cast %252 : vector<16xf32> to vector<16x1xf32>
    %cst_96 = arith.constant 3.200000e+01 : f32
    %254 = vector.broadcast %cst_96 : f32 to vector<16x1xf32>
    %255 = arith.divf %253, %254 : vector<16x1xf32>
    %256 = vector.broadcast %248 : vector<16x1xf32> to vector<16x32xf32>
    %257 = arith.subf %240, %256 : vector<16x32xf32>
    %cst_97 = arith.constant 9.99999996E-13 : f32
    %258 = vector.broadcast %cst_97 : f32 to vector<16x1xf32>
    %259 = arith.addf %255, %258 : vector<16x1xf32>
    %260 = math.rsqrt %259 : vector<16x1xf32>
    %261 = vector.broadcast %260 : vector<16x1xf32> to vector<16x32xf32>
    %262 = arith.mulf %257, %261 : vector<16x32xf32>
    %263 = vector.broadcast %242 : vector<1x32xf32> to vector<16x32xf32>
    %264 = arith.mulf %262, %263 : vector<16x32xf32>
    %265 = vector.broadcast %244 : vector<1x32xf32> to vector<16x32xf32>
    %266 = arith.addf %264, %265 : vector<16x32xf32>
    %c1 = arith.constant 1 : index
    %c0_98 = arith.constant 0 : index
    %c0_99 = arith.constant 0 : index
    %267 = vector.load %arg5[%c1, %c0_98, %c0_99] : memref<2x32x96xf32, #tpu.memory_space<vmem>>, vector<1x32x96xf32>
    %268 = vector.shape_cast %267 : vector<1x32x96xf32> to vector<32x96xf32>
    %cst_100 = arith.constant dense<0.000000e+00> : vector<16x96xf32>
    %269 = tpu.matmul %266, %268, %cst_100 {dimension_numbers = #tpu.dot_dimension_numbers<[1], [0], [0], [1], [0, 0, 1, 1], [], []>} : vector<16x32xf32>, vector<32x96xf32>, vector<16x96xf32> -> vector<16x96xf32>
    %c1_101 = arith.constant 1 : index
    %c0_102 = arith.constant 0 : index
    %c0_103 = arith.constant 0 : index
    %270 = vector.load %arg6[%c1_101, %c0_102, %c0_103] : memref<2x1x96xf32, #tpu.memory_space<vmem>>, vector<1x1x96xf32>
    %271 = vector.shape_cast %270 : vector<1x1x96xf32> to vector<1x96xf32>
    %272 = vector.broadcast %271 : vector<1x96xf32> to vector<16x96xf32>
    %273 = arith.addf %269, %272 : vector<16x96xf32>
    %274 = vector.extract_strided_slice %273 {offsets = [0, 0], sizes = [16, 32], strides = [1, 1]} : vector<16x96xf32> to vector<16x32xf32>
    %cst_104 = arith.constant 0.353553385 : f32
    %275 = vector.broadcast %cst_104 : f32 to vector<16x32xf32>
    %276 = arith.mulf %274, %275 : vector<16x32xf32>
    %277 = vector.extract_strided_slice %273 {offsets = [0, 32], sizes = [16, 32], strides = [1, 1]} : vector<16x96xf32> to vector<16x32xf32>
    %278 = vector.extract_strided_slice %273 {offsets = [0, 64], sizes = [16, 32], strides = [1, 1]} : vector<16x96xf32> to vector<16x32xf32>
    %279 = vector.extract_strided_slice %25 {offsets = [0, 0], sizes = [1, 8], strides = [1, 1]} : vector<2x8xf32> to vector<1x8xf32>
    %280 = vector.extract_strided_slice %276 {offsets = [0, 0], sizes = [8, 8], strides = [1, 1]} : vector<16x32xf32> to vector<8x8xf32>
    %281 = vector.extract_strided_slice %277 {offsets = [0, 0], sizes = [8, 8], strides = [1, 1]} : vector<16x32xf32> to vector<8x8xf32>
    %282 = vector.extract_strided_slice %278 {offsets = [0, 0], sizes = [8, 8], strides = [1, 1]} : vector<16x32xf32> to vector<8x8xf32>
    %cst_105 = arith.constant dense<0.000000e+00> : vector<8x8xf32>
    %283 = tpu.matmul %280, %281, %cst_105 {dimension_numbers = #tpu.dot_dimension_numbers<[1], [1], [0], [0], [0, 0, 1, 0], [], []>} : vector<8x8xf32>, vector<8x8xf32>, vector<8x8xf32> -> vector<8x8xf32>
    %284 = vector.broadcast %279 : vector<1x8xf32> to vector<8x8xf32>
    %285 = arith.addf %283, %284 : vector<8x8xf32>
    %cst_106 = arith.constant dense<0xFF800000> : vector<8xf32>
    %286 = vector.multi_reduction <maximumf>, %285, %cst_106 [1] : vector<8x8xf32> to vector<8xf32>
    %287 = vector.shape_cast %286 : vector<8xf32> to vector<8x1xf32>
    %288 = vector.broadcast %287 : vector<8x1xf32> to vector<8x8xf32>
    %289 = arith.subf %285, %288 : vector<8x8xf32>
    %290 = math.exp %289 : vector<8x8xf32>
    %cst_107 = arith.constant dense<0.000000e+00> : vector<8xf32>
    %291 = vector.multi_reduction <add>, %290, %cst_107 [1] : vector<8x8xf32> to vector<8xf32>
    %292 = vector.shape_cast %291 : vector<8xf32> to vector<8x1xf32>
    %293 = tpu.reciprocal %292 {approx = true} : vector<8x1xf32> -> vector<8x1xf32>
    %294 = vector.broadcast %293 : vector<8x1xf32> to vector<8x8xf32>
    %295 = arith.mulf %290, %294 : vector<8x8xf32>
    %cst_108 = arith.constant dense<0.000000e+00> : vector<8x8xf32>
    %296 = tpu.matmul %295, %282, %cst_108 {dimension_numbers = #tpu.dot_dimension_numbers<[1], [0], [0], [1], [0, 0, 1, 1], [], []>} : vector<8x8xf32>, vector<8x8xf32>, vector<8x8xf32> -> vector<8x8xf32>
    %297 = vector.extract_strided_slice %276 {offsets = [0, 8], sizes = [8, 8], strides = [1, 1]} : vector<16x32xf32> to vector<8x8xf32>
    %298 = vector.extract_strided_slice %277 {offsets = [0, 8], sizes = [8, 8], strides = [1, 1]} : vector<16x32xf32> to vector<8x8xf32>
    %299 = vector.extract_strided_slice %278 {offsets = [0, 8], sizes = [8, 8], strides = [1, 1]} : vector<16x32xf32> to vector<8x8xf32>
    %cst_109 = arith.constant dense<0.000000e+00> : vector<8x8xf32>
    %300 = tpu.matmul %297, %298, %cst_109 {dimension_numbers = #tpu.dot_dimension_numbers<[1], [1], [0], [0], [0, 0, 1, 0], [], []>} : vector<8x8xf32>, vector<8x8xf32>, vector<8x8xf32> -> vector<8x8xf32>
    %301 = vector.broadcast %279 : vector<1x8xf32> to vector<8x8xf32>
    %302 = arith.addf %300, %301 : vector<8x8xf32>
    %cst_110 = arith.constant dense<0xFF800000> : vector<8xf32>
    %303 = vector.multi_reduction <maximumf>, %302, %cst_110 [1] : vector<8x8xf32> to vector<8xf32>
    %304 = vector.shape_cast %303 : vector<8xf32> to vector<8x1xf32>
    %305 = vector.broadcast %304 : vector<8x1xf32> to vector<8x8xf32>
    %306 = arith.subf %302, %305 : vector<8x8xf32>
    %307 = math.exp %306 : vector<8x8xf32>
    %cst_111 = arith.constant dense<0.000000e+00> : vector<8xf32>
    %308 = vector.multi_reduction <add>, %307, %cst_111 [1] : vector<8x8xf32> to vector<8xf32>
    %309 = vector.shape_cast %308 : vector<8xf32> to vector<8x1xf32>
    %310 = tpu.reciprocal %309 {approx = true} : vector<8x1xf32> -> vector<8x1xf32>
    %311 = vector.broadcast %310 : vector<8x1xf32> to vector<8x8xf32>
    %312 = arith.mulf %307, %311 : vector<8x8xf32>
    %cst_112 = arith.constant dense<0.000000e+00> : vector<8x8xf32>
    %313 = tpu.matmul %312, %299, %cst_112 {dimension_numbers = #tpu.dot_dimension_numbers<[1], [0], [0], [1], [0, 0, 1, 1], [], []>} : vector<8x8xf32>, vector<8x8xf32>, vector<8x8xf32> -> vector<8x8xf32>
    %314 = vector.extract_strided_slice %276 {offsets = [0, 16], sizes = [8, 8], strides = [1, 1]} : vector<16x32xf32> to vector<8x8xf32>
    %315 = vector.extract_strided_slice %277 {offsets = [0, 16], sizes = [8, 8], strides = [1, 1]} : vector<16x32xf32> to vector<8x8xf32>
    %316 = vector.extract_strided_slice %278 {offsets = [0, 16], sizes = [8, 8], strides = [1, 1]} : vector<16x32xf32> to vector<8x8xf32>
    %cst_113 = arith.constant dense<0.000000e+00> : vector<8x8xf32>
    %317 = tpu.matmul %314, %315, %cst_113 {dimension_numbers = #tpu.dot_dimension_numbers<[1], [1], [0], [0], [0, 0, 1, 0], [], []>} : vector<8x8xf32>, vector<8x8xf32>, vector<8x8xf32> -> vector<8x8xf32>
    %318 = vector.broadcast %279 : vector<1x8xf32> to vector<8x8xf32>
    %319 = arith.addf %317, %318 : vector<8x8xf32>
    %cst_114 = arith.constant dense<0xFF800000> : vector<8xf32>
    %320 = vector.multi_reduction <maximumf>, %319, %cst_114 [1] : vector<8x8xf32> to vector<8xf32>
    %321 = vector.shape_cast %320 : vector<8xf32> to vector<8x1xf32>
    %322 = vector.broadcast %321 : vector<8x1xf32> to vector<8x8xf32>
    %323 = arith.subf %319, %322 : vector<8x8xf32>
    %324 = math.exp %323 : vector<8x8xf32>
    %cst_115 = arith.constant dense<0.000000e+00> : vector<8xf32>
    %325 = vector.multi_reduction <add>, %324, %cst_115 [1] : vector<8x8xf32> to vector<8xf32>
    %326 = vector.shape_cast %325 : vector<8xf32> to vector<8x1xf32>
    %327 = tpu.reciprocal %326 {approx = true} : vector<8x1xf32> -> vector<8x1xf32>
    %328 = vector.broadcast %327 : vector<8x1xf32> to vector<8x8xf32>
    %329 = arith.mulf %324, %328 : vector<8x8xf32>
    %cst_116 = arith.constant dense<0.000000e+00> : vector<8x8xf32>
    %330 = tpu.matmul %329, %316, %cst_116 {dimension_numbers = #tpu.dot_dimension_numbers<[1], [0], [0], [1], [0, 0, 1, 1], [], []>} : vector<8x8xf32>, vector<8x8xf32>, vector<8x8xf32> -> vector<8x8xf32>
    %331 = vector.extract_strided_slice %276 {offsets = [0, 24], sizes = [8, 8], strides = [1, 1]} : vector<16x32xf32> to vector<8x8xf32>
    %332 = vector.extract_strided_slice %277 {offsets = [0, 24], sizes = [8, 8], strides = [1, 1]} : vector<16x32xf32> to vector<8x8xf32>
    %333 = vector.extract_strided_slice %278 {offsets = [0, 24], sizes = [8, 8], strides = [1, 1]} : vector<16x32xf32> to vector<8x8xf32>
    %cst_117 = arith.constant dense<0.000000e+00> : vector<8x8xf32>
    %334 = tpu.matmul %331, %332, %cst_117 {dimension_numbers = #tpu.dot_dimension_numbers<[1], [1], [0], [0], [0, 0, 1, 0], [], []>} : vector<8x8xf32>, vector<8x8xf32>, vector<8x8xf32> -> vector<8x8xf32>
    %335 = vector.broadcast %279 : vector<1x8xf32> to vector<8x8xf32>
    %336 = arith.addf %334, %335 : vector<8x8xf32>
    %cst_118 = arith.constant dense<0xFF800000> : vector<8xf32>
    %337 = vector.multi_reduction <maximumf>, %336, %cst_118 [1] : vector<8x8xf32> to vector<8xf32>
    %338 = vector.shape_cast %337 : vector<8xf32> to vector<8x1xf32>
    %339 = vector.broadcast %338 : vector<8x1xf32> to vector<8x8xf32>
    %340 = arith.subf %336, %339 : vector<8x8xf32>
    %341 = math.exp %340 : vector<8x8xf32>
    %cst_119 = arith.constant dense<0.000000e+00> : vector<8xf32>
    %342 = vector.multi_reduction <add>, %341, %cst_119 [1] : vector<8x8xf32> to vector<8xf32>
    %343 = vector.shape_cast %342 : vector<8xf32> to vector<8x1xf32>
    %344 = tpu.reciprocal %343 {approx = true} : vector<8x1xf32> -> vector<8x1xf32>
    %345 = vector.broadcast %344 : vector<8x1xf32> to vector<8x8xf32>
    %346 = arith.mulf %341, %345 : vector<8x8xf32>
    %cst_120 = arith.constant dense<0.000000e+00> : vector<8x8xf32>
    %347 = tpu.matmul %346, %333, %cst_120 {dimension_numbers = #tpu.dot_dimension_numbers<[1], [0], [0], [1], [0, 0, 1, 1], [], []>} : vector<8x8xf32>, vector<8x8xf32>, vector<8x8xf32> -> vector<8x8xf32>
    %348 = tpu.concatenate %296, %313, %330, %347 in 1 : vector<8x8xf32>, vector<8x8xf32>, vector<8x8xf32>, vector<8x8xf32> -> vector<8x32xf32>
    %349 = vector.extract_strided_slice %25 {offsets = [1, 0], sizes = [1, 8], strides = [1, 1]} : vector<2x8xf32> to vector<1x8xf32>
    %350 = vector.extract_strided_slice %276 {offsets = [8, 0], sizes = [8, 8], strides = [1, 1]} : vector<16x32xf32> to vector<8x8xf32>
    %351 = vector.extract_strided_slice %277 {offsets = [8, 0], sizes = [8, 8], strides = [1, 1]} : vector<16x32xf32> to vector<8x8xf32>
    %352 = vector.extract_strided_slice %278 {offsets = [8, 0], sizes = [8, 8], strides = [1, 1]} : vector<16x32xf32> to vector<8x8xf32>
    %cst_121 = arith.constant dense<0.000000e+00> : vector<8x8xf32>
    %353 = tpu.matmul %350, %351, %cst_121 {dimension_numbers = #tpu.dot_dimension_numbers<[1], [1], [0], [0], [0, 0, 1, 0], [], []>} : vector<8x8xf32>, vector<8x8xf32>, vector<8x8xf32> -> vector<8x8xf32>
    %354 = vector.broadcast %349 : vector<1x8xf32> to vector<8x8xf32>
    %355 = arith.addf %353, %354 : vector<8x8xf32>
    %cst_122 = arith.constant dense<0xFF800000> : vector<8xf32>
    %356 = vector.multi_reduction <maximumf>, %355, %cst_122 [1] : vector<8x8xf32> to vector<8xf32>
    %357 = vector.shape_cast %356 : vector<8xf32> to vector<8x1xf32>
    %358 = vector.broadcast %357 : vector<8x1xf32> to vector<8x8xf32>
    %359 = arith.subf %355, %358 : vector<8x8xf32>
    %360 = math.exp %359 : vector<8x8xf32>
    %cst_123 = arith.constant dense<0.000000e+00> : vector<8xf32>
    %361 = vector.multi_reduction <add>, %360, %cst_123 [1] : vector<8x8xf32> to vector<8xf32>
    %362 = vector.shape_cast %361 : vector<8xf32> to vector<8x1xf32>
    %363 = tpu.reciprocal %362 {approx = true} : vector<8x1xf32> -> vector<8x1xf32>
    %364 = vector.broadcast %363 : vector<8x1xf32> to vector<8x8xf32>
    %365 = arith.mulf %360, %364 : vector<8x8xf32>
    %cst_124 = arith.constant dense<0.000000e+00> : vector<8x8xf32>
    %366 = tpu.matmul %365, %352, %cst_124 {dimension_numbers = #tpu.dot_dimension_numbers<[1], [0], [0], [1], [0, 0, 1, 1], [], []>} : vector<8x8xf32>, vector<8x8xf32>, vector<8x8xf32> -> vector<8x8xf32>
    %367 = vector.extract_strided_slice %276 {offsets = [8, 8], sizes = [8, 8], strides = [1, 1]} : vector<16x32xf32> to vector<8x8xf32>
    %368 = vector.extract_strided_slice %277 {offsets = [8, 8], sizes = [8, 8], strides = [1, 1]} : vector<16x32xf32> to vector<8x8xf32>
    %369 = vector.extract_strided_slice %278 {offsets = [8, 8], sizes = [8, 8], strides = [1, 1]} : vector<16x32xf32> to vector<8x8xf32>
    %cst_125 = arith.constant dense<0.000000e+00> : vector<8x8xf32>
    %370 = tpu.matmul %367, %368, %cst_125 {dimension_numbers = #tpu.dot_dimension_numbers<[1], [1], [0], [0], [0, 0, 1, 0], [], []>} : vector<8x8xf32>, vector<8x8xf32>, vector<8x8xf32> -> vector<8x8xf32>
    %371 = vector.broadcast %349 : vector<1x8xf32> to vector<8x8xf32>
    %372 = arith.addf %370, %371 : vector<8x8xf32>
    %cst_126 = arith.constant dense<0xFF800000> : vector<8xf32>
    %373 = vector.multi_reduction <maximumf>, %372, %cst_126 [1] : vector<8x8xf32> to vector<8xf32>
    %374 = vector.shape_cast %373 : vector<8xf32> to vector<8x1xf32>
    %375 = vector.broadcast %374 : vector<8x1xf32> to vector<8x8xf32>
    %376 = arith.subf %372, %375 : vector<8x8xf32>
    %377 = math.exp %376 : vector<8x8xf32>
    %cst_127 = arith.constant dense<0.000000e+00> : vector<8xf32>
    %378 = vector.multi_reduction <add>, %377, %cst_127 [1] : vector<8x8xf32> to vector<8xf32>
    %379 = vector.shape_cast %378 : vector<8xf32> to vector<8x1xf32>
    %380 = tpu.reciprocal %379 {approx = true} : vector<8x1xf32> -> vector<8x1xf32>
    %381 = vector.broadcast %380 : vector<8x1xf32> to vector<8x8xf32>
    %382 = arith.mulf %377, %381 : vector<8x8xf32>
    %cst_128 = arith.constant dense<0.000000e+00> : vector<8x8xf32>
    %383 = tpu.matmul %382, %369, %cst_128 {dimension_numbers = #tpu.dot_dimension_numbers<[1], [0], [0], [1], [0, 0, 1, 1], [], []>} : vector<8x8xf32>, vector<8x8xf32>, vector<8x8xf32> -> vector<8x8xf32>
    %384 = vector.extract_strided_slice %276 {offsets = [8, 16], sizes = [8, 8], strides = [1, 1]} : vector<16x32xf32> to vector<8x8xf32>
    %385 = vector.extract_strided_slice %277 {offsets = [8, 16], sizes = [8, 8], strides = [1, 1]} : vector<16x32xf32> to vector<8x8xf32>
    %386 = vector.extract_strided_slice %278 {offsets = [8, 16], sizes = [8, 8], strides = [1, 1]} : vector<16x32xf32> to vector<8x8xf32>
    %cst_129 = arith.constant dense<0.000000e+00> : vector<8x8xf32>
    %387 = tpu.matmul %384, %385, %cst_129 {dimension_numbers = #tpu.dot_dimension_numbers<[1], [1], [0], [0], [0, 0, 1, 0], [], []>} : vector<8x8xf32>, vector<8x8xf32>, vector<8x8xf32> -> vector<8x8xf32>
    %388 = vector.broadcast %349 : vector<1x8xf32> to vector<8x8xf32>
    %389 = arith.addf %387, %388 : vector<8x8xf32>
    %cst_130 = arith.constant dense<0xFF800000> : vector<8xf32>
    %390 = vector.multi_reduction <maximumf>, %389, %cst_130 [1] : vector<8x8xf32> to vector<8xf32>
    %391 = vector.shape_cast %390 : vector<8xf32> to vector<8x1xf32>
    %392 = vector.broadcast %391 : vector<8x1xf32> to vector<8x8xf32>
    %393 = arith.subf %389, %392 : vector<8x8xf32>
    %394 = math.exp %393 : vector<8x8xf32>
    %cst_131 = arith.constant dense<0.000000e+00> : vector<8xf32>
    %395 = vector.multi_reduction <add>, %394, %cst_131 [1] : vector<8x8xf32> to vector<8xf32>
    %396 = vector.shape_cast %395 : vector<8xf32> to vector<8x1xf32>
    %397 = tpu.reciprocal %396 {approx = true} : vector<8x1xf32> -> vector<8x1xf32>
    %398 = vector.broadcast %397 : vector<8x1xf32> to vector<8x8xf32>
    %399 = arith.mulf %394, %398 : vector<8x8xf32>
    %cst_132 = arith.constant dense<0.000000e+00> : vector<8x8xf32>
    %400 = tpu.matmul %399, %386, %cst_132 {dimension_numbers = #tpu.dot_dimension_numbers<[1], [0], [0], [1], [0, 0, 1, 1], [], []>} : vector<8x8xf32>, vector<8x8xf32>, vector<8x8xf32> -> vector<8x8xf32>
    %401 = vector.extract_strided_slice %276 {offsets = [8, 24], sizes = [8, 8], strides = [1, 1]} : vector<16x32xf32> to vector<8x8xf32>
    %402 = vector.extract_strided_slice %277 {offsets = [8, 24], sizes = [8, 8], strides = [1, 1]} : vector<16x32xf32> to vector<8x8xf32>
    %403 = vector.extract_strided_slice %278 {offsets = [8, 24], sizes = [8, 8], strides = [1, 1]} : vector<16x32xf32> to vector<8x8xf32>
    %cst_133 = arith.constant dense<0.000000e+00> : vector<8x8xf32>
    %404 = tpu.matmul %401, %402, %cst_133 {dimension_numbers = #tpu.dot_dimension_numbers<[1], [1], [0], [0], [0, 0, 1, 0], [], []>} : vector<8x8xf32>, vector<8x8xf32>, vector<8x8xf32> -> vector<8x8xf32>
    %405 = vector.broadcast %349 : vector<1x8xf32> to vector<8x8xf32>
    %406 = arith.addf %404, %405 : vector<8x8xf32>
    %cst_134 = arith.constant dense<0xFF800000> : vector<8xf32>
    %407 = vector.multi_reduction <maximumf>, %406, %cst_134 [1] : vector<8x8xf32> to vector<8xf32>
    %408 = vector.shape_cast %407 : vector<8xf32> to vector<8x1xf32>
    %409 = vector.broadcast %408 : vector<8x1xf32> to vector<8x8xf32>
    %410 = arith.subf %406, %409 : vector<8x8xf32>
    %411 = math.exp %410 : vector<8x8xf32>
    %cst_135 = arith.constant dense<0.000000e+00> : vector<8xf32>
    %412 = vector.multi_reduction <add>, %411, %cst_135 [1] : vector<8x8xf32> to vector<8xf32>
    %413 = vector.shape_cast %412 : vector<8xf32> to vector<8x1xf32>
    %414 = tpu.reciprocal %413 {approx = true} : vector<8x1xf32> -> vector<8x1xf32>
    %415 = vector.broadcast %414 : vector<8x1xf32> to vector<8x8xf32>
    %416 = arith.mulf %411, %415 : vector<8x8xf32>
    %cst_136 = arith.constant dense<0.000000e+00> : vector<8x8xf32>
    %417 = tpu.matmul %416, %403, %cst_136 {dimension_numbers = #tpu.dot_dimension_numbers<[1], [0], [0], [1], [0, 0, 1, 1], [], []>} : vector<8x8xf32>, vector<8x8xf32>, vector<8x8xf32> -> vector<8x8xf32>
    %418 = tpu.concatenate %366, %383, %400, %417 in 1 : vector<8x8xf32>, vector<8x8xf32>, vector<8x8xf32>, vector<8x8xf32> -> vector<8x32xf32>
    %419 = tpu.concatenate %348, %418 in 0 : vector<8x32xf32>, vector<8x32xf32> -> vector<16x32xf32>
    %c1_137 = arith.constant 1 : index
    %c0_138 = arith.constant 0 : index
    %c0_139 = arith.constant 0 : index
    %420 = vector.load %arg7[%c1_137, %c0_138, %c0_139] : memref<2x32x32xf32, #tpu.memory_space<vmem>>, vector<1x32x32xf32>
    %421 = vector.shape_cast %420 : vector<1x32x32xf32> to vector<32x32xf32>
    %cst_140 = arith.constant dense<0.000000e+00> : vector<16x32xf32>
    %422 = tpu.matmul %419, %421, %cst_140 {dimension_numbers = #tpu.dot_dimension_numbers<[1], [0], [0], [1], [0, 0, 1, 1], [], []>} : vector<16x32xf32>, vector<32x32xf32>, vector<16x32xf32> -> vector<16x32xf32>
    %c1_141 = arith.constant 1 : index
    %c0_142 = arith.constant 0 : index
    %c0_143 = arith.constant 0 : index
    %423 = vector.load %arg8[%c1_141, %c0_142, %c0_143] : memref<2x1x32xf32, #tpu.memory_space<vmem>>, vector<1x1x32xf32>
    %424 = vector.shape_cast %423 : vector<1x1x32xf32> to vector<1x32xf32>
    %425 = vector.broadcast %424 : vector<1x32xf32> to vector<16x32xf32>
    %426 = arith.addf %422, %425 : vector<16x32xf32>
    %427 = arith.addf %266, %426 : vector<16x32xf32>
    %c1_144 = arith.constant 1 : index
    %c0_145 = arith.constant 0 : index
    %c0_146 = arith.constant 0 : index
    %428 = vector.load %arg9[%c1_144, %c0_145, %c0_146] : memref<2x1x32xf32, #tpu.memory_space<vmem>>, vector<1x1x32xf32>
    %429 = vector.shape_cast %428 : vector<1x1x32xf32> to vector<1x32xf32>
    %c1_147 = arith.constant 1 : index
    %c0_148 = arith.constant 0 : index
    %c0_149 = arith.constant 0 : index
    %430 = vector.load %arg10[%c1_147, %c0_148, %c0_149] : memref<2x1x32xf32, #tpu.memory_space<vmem>>, vector<1x1x32xf32>
    %431 = vector.shape_cast %430 : vector<1x1x32xf32> to vector<1x32xf32>
    %cst_150 = arith.constant dense<0.000000e+00> : vector<16xf32>
    %432 = vector.multi_reduction <add>, %427, %cst_150 [1] : vector<16x32xf32> to vector<16xf32>
    %433 = vector.shape_cast %432 : vector<16xf32> to vector<16x1xf32>
    %cst_151 = arith.constant 3.200000e+01 : f32
    %434 = vector.broadcast %cst_151 : f32 to vector<16x1xf32>
    %435 = arith.divf %433, %434 : vector<16x1xf32>
    %436 = vector.broadcast %435 : vector<16x1xf32> to vector<16x32xf32>
    %437 = arith.subf %427, %436 : vector<16x32xf32>
    %438 = arith.mulf %437, %437 : vector<16x32xf32>
    %cst_152 = arith.constant dense<0.000000e+00> : vector<16xf32>
    %439 = vector.multi_reduction <add>, %438, %cst_152 [1] : vector<16x32xf32> to vector<16xf32>
    %440 = vector.shape_cast %439 : vector<16xf32> to vector<16x1xf32>
    %cst_153 = arith.constant 3.200000e+01 : f32
    %441 = vector.broadcast %cst_153 : f32 to vector<16x1xf32>
    %442 = arith.divf %440, %441 : vector<16x1xf32>
    %443 = vector.broadcast %435 : vector<16x1xf32> to vector<16x32xf32>
    %444 = arith.subf %427, %443 : vector<16x32xf32>
    %cst_154 = arith.constant 9.99999996E-13 : f32
    %445 = vector.broadcast %cst_154 : f32 to vector<16x1xf32>
    %446 = arith.addf %442, %445 : vector<16x1xf32>
    %447 = math.rsqrt %446 : vector<16x1xf32>
    %448 = vector.broadcast %447 : vector<16x1xf32> to vector<16x32xf32>
    %449 = arith.mulf %444, %448 : vector<16x32xf32>
    %450 = vector.broadcast %429 : vector<1x32xf32> to vector<16x32xf32>
    %451 = arith.mulf %449, %450 : vector<16x32xf32>
    %452 = vector.broadcast %431 : vector<1x32xf32> to vector<16x32xf32>
    %453 = arith.addf %451, %452 : vector<16x32xf32>
    %c1_155 = arith.constant 1 : index
    %c0_156 = arith.constant 0 : index
    %c0_157 = arith.constant 0 : index
    %454 = vector.load %arg11[%c1_155, %c0_156, %c0_157] : memref<2x32x64xf32, #tpu.memory_space<vmem>>, vector<1x32x64xf32>
    %455 = vector.shape_cast %454 : vector<1x32x64xf32> to vector<32x64xf32>
    %cst_158 = arith.constant dense<0.000000e+00> : vector<16x64xf32>
    %456 = tpu.matmul %453, %455, %cst_158 {dimension_numbers = #tpu.dot_dimension_numbers<[1], [0], [0], [1], [0, 0, 1, 1], [], []>} : vector<16x32xf32>, vector<32x64xf32>, vector<16x64xf32> -> vector<16x64xf32>
    %c1_159 = arith.constant 1 : index
    %c0_160 = arith.constant 0 : index
    %c0_161 = arith.constant 0 : index
    %457 = vector.load %arg12[%c1_159, %c0_160, %c0_161] : memref<2x1x64xf32, #tpu.memory_space<vmem>>, vector<1x1x64xf32>
    %458 = vector.shape_cast %457 : vector<1x1x64xf32> to vector<1x64xf32>
    %459 = vector.broadcast %458 : vector<1x64xf32> to vector<16x64xf32>
    %460 = arith.addf %456, %459 : vector<16x64xf32>
    %461 = arith.mulf %460, %460 : vector<16x64xf32>
    %462 = arith.mulf %460, %461 : vector<16x64xf32>
    %cst_162 = arith.constant 4.471500e-02 : f32
    %463 = vector.broadcast %cst_162 : f32 to vector<16x64xf32>
    %464 = arith.mulf %463, %462 : vector<16x64xf32>
    %465 = arith.addf %460, %464 : vector<16x64xf32>
    %cst_163 = arith.constant 0.797884583 : f32
    %466 = vector.broadcast %cst_163 : f32 to vector<16x64xf32>
    %467 = arith.mulf %466, %465 : vector<16x64xf32>
    %468 = math.tanh %467 : vector<16x64xf32>
    %cst_164 = arith.constant 1.000000e+00 : f32
    %469 = vector.broadcast %cst_164 : f32 to vector<16x64xf32>
    %470 = arith.addf %469, %468 : vector<16x64xf32>
    %cst_165 = arith.constant 5.000000e-01 : f32
    %471 = vector.broadcast %cst_165 : f32 to vector<16x64xf32>
    %472 = arith.mulf %471, %470 : vector<16x64xf32>
    %473 = arith.mulf %460, %472 : vector<16x64xf32>
    %c1_166 = arith.constant 1 : index
    %c0_167 = arith.constant 0 : index
    %c0_168 = arith.constant 0 : index
    %474 = vector.load %arg13[%c1_166, %c0_167, %c0_168] : memref<2x64x32xf32, #tpu.memory_space<vmem>>, vector<1x64x32xf32>
    %475 = vector.shape_cast %474 : vector<1x64x32xf32> to vector<64x32xf32>
    %cst_169 = arith.constant dense<0.000000e+00> : vector<16x32xf32>
    %476 = tpu.matmul %473, %475, %cst_169 {dimension_numbers = #tpu.dot_dimension_numbers<[1], [0], [0], [1], [0, 0, 1, 1], [], []>} : vector<16x64xf32>, vector<64x32xf32>, vector<16x32xf32> -> vector<16x32xf32>
    %c1_170 = arith.constant 1 : index
    %c0_171 = arith.constant 0 : index
    %c0_172 = arith.constant 0 : index
    %477 = vector.load %arg14[%c1_170, %c0_171, %c0_172] : memref<2x1x32xf32, #tpu.memory_space<vmem>>, vector<1x1x32xf32>
    %478 = vector.shape_cast %477 : vector<1x1x32xf32> to vector<1x32xf32>
    %479 = vector.broadcast %478 : vector<1x32xf32> to vector<16x32xf32>
    %480 = arith.addf %476, %479 : vector<16x32xf32>
    %481 = arith.addf %453, %480 : vector<16x32xf32>
    %c1_173 = arith.constant 1 : index
    %c0_174 = arith.constant 0 : index
    %c0_175 = arith.constant 0 : index
    %482 = vector.load %arg15[%c1_173, %c0_174, %c0_175] : memref<2x1x32xf32, #tpu.memory_space<vmem>>, vector<1x1x32xf32>
    %483 = vector.shape_cast %482 : vector<1x1x32xf32> to vector<1x32xf32>
    %c1_176 = arith.constant 1 : index
    %c0_177 = arith.constant 0 : index
    %c0_178 = arith.constant 0 : index
    %484 = vector.load %arg16[%c1_176, %c0_177, %c0_178] : memref<2x1x32xf32, #tpu.memory_space<vmem>>, vector<1x1x32xf32>
    %485 = vector.shape_cast %484 : vector<1x1x32xf32> to vector<1x32xf32>
    %cst_179 = arith.constant dense<0.000000e+00> : vector<16xf32>
    %486 = vector.multi_reduction <add>, %481, %cst_179 [1] : vector<16x32xf32> to vector<16xf32>
    %487 = vector.shape_cast %486 : vector<16xf32> to vector<16x1xf32>
    %cst_180 = arith.constant 3.200000e+01 : f32
    %488 = vector.broadcast %cst_180 : f32 to vector<16x1xf32>
    %489 = arith.divf %487, %488 : vector<16x1xf32>
    %490 = vector.broadcast %489 : vector<16x1xf32> to vector<16x32xf32>
    %491 = arith.subf %481, %490 : vector<16x32xf32>
    %492 = arith.mulf %491, %491 : vector<16x32xf32>
    %cst_181 = arith.constant dense<0.000000e+00> : vector<16xf32>
    %493 = vector.multi_reduction <add>, %492, %cst_181 [1] : vector<16x32xf32> to vector<16xf32>
    %494 = vector.shape_cast %493 : vector<16xf32> to vector<16x1xf32>
    %cst_182 = arith.constant 3.200000e+01 : f32
    %495 = vector.broadcast %cst_182 : f32 to vector<16x1xf32>
    %496 = arith.divf %494, %495 : vector<16x1xf32>
    %497 = vector.broadcast %489 : vector<16x1xf32> to vector<16x32xf32>
    %498 = arith.subf %481, %497 : vector<16x32xf32>
    %cst_183 = arith.constant 9.99999996E-13 : f32
    %499 = vector.broadcast %cst_183 : f32 to vector<16x1xf32>
    %500 = arith.addf %496, %499 : vector<16x1xf32>
    %501 = math.rsqrt %500 : vector<16x1xf32>
    %502 = vector.broadcast %501 : vector<16x1xf32> to vector<16x32xf32>
    %503 = arith.mulf %498, %502 : vector<16x32xf32>
    %504 = vector.broadcast %483 : vector<1x32xf32> to vector<16x32xf32>
    %505 = arith.mulf %503, %504 : vector<16x32xf32>
    %506 = vector.broadcast %485 : vector<1x32xf32> to vector<16x32xf32>
    %507 = arith.addf %505, %506 : vector<16x32xf32>
    %508 = vector.extract_strided_slice %507 {offsets = [0, 0], sizes = [1, 32], strides = [1, 1]} : vector<16x32xf32> to vector<1x32xf32>
    %509 = vector.extract_strided_slice %507 {offsets = [8, 0], sizes = [1, 32], strides = [1, 1]} : vector<16x32xf32> to vector<1x32xf32>
    %510 = tpu.concatenate %508, %509 in 0 : vector<1x32xf32>, vector<1x32xf32> -> vector<2x32xf32>
    %c0_184 = arith.constant 0 : index
    %c0_185 = arith.constant 0 : index
    %511 = vector.load %arg17[%c0_184, %c0_185] : memref<32x32xf32, #tpu.memory_space<vmem>>, vector<32x32xf32>
    %cst_186 = arith.constant dense<0.000000e+00> : vector<2x32xf32>
    %512 = tpu.matmul %510, %511, %cst_186 {dimension_numbers = #tpu.dot_dimension_numbers<[1], [0], [0], [1], [0, 0, 1, 1], [], []>} : vector<2x32xf32>, vector<32x32xf32>, vector<2x32xf32> -> vector<2x32xf32>
    %c0_187 = arith.constant 0 : index
    %c0_188 = arith.constant 0 : index
    %513 = vector.load %arg18[%c0_187, %c0_188] : memref<1x32xf32, #tpu.memory_space<vmem>>, vector<1x32xf32>
    %514 = vector.broadcast %513 : vector<1x32xf32> to vector<2x32xf32>
    %515 = arith.addf %512, %514 : vector<2x32xf32>
    %516 = math.tanh %515 : vector<2x32xf32>
    %c0_189 = arith.constant 0 : index
    %c0_190 = arith.constant 0 : index
    %517 = vector.load %arg19[%c0_189, %c0_190] : memref<32x3xf32, #tpu.memory_space<vmem>>, vector<32x3xf32>
    %cst_191 = arith.constant dense<0.000000e+00> : vector<2x3xf32>
    %518 = tpu.matmul %516, %517, %cst_191 {dimension_numbers = #tpu.dot_dimension_numbers<[1], [0], [0], [1], [0, 0, 1, 1], [], []>} : vector<2x32xf32>, vector<32x3xf32>, vector<2x3xf32> -> vector<2x3xf32>
    %c0_192 = arith.constant 0 : index
    %c0_193 = arith.constant 0 : index
    %519 = vector.load %arg20[%c0_192, %c0_193] : memref<1x3xf32, #tpu.memory_space<vmem>>, vector<1x3xf32>
    %520 = vector.broadcast %519 : vector<1x3xf32> to vector<2x3xf32>
    %521 = arith.addf %518, %520 : vector<2x3xf32>
    %522 = arith.negf %521 : vector<2x3xf32>
    %523 = math.exp %522 : vector<2x3xf32>
    %cst_194 = arith.constant 1.000000e+00 : f32
    %524 = vector.broadcast %cst_194 : f32 to vector<2x3xf32>
    %525 = arith.addf %524, %523 : vector<2x3xf32>
    %526 = arith.divf %524, %525 : vector<2x3xf32>
    %c0_195 = arith.constant 0 : index
    %c0_196 = arith.constant 0 : index
    %527 = vector.load %arg21[%c0_195, %c0_196] : memref<2x3xf32, #tpu.memory_space<vmem>>, vector<2x3xf32>
    tpu.vector_store %arg21[%c0_195, %c0_196], %526 {strides = array<i32>} : memref<2x3xf32, #tpu.memory_space<vmem>>, vector<2x3xf32>,
    %c0_197 = arith.constant 0 : index
    %c0_198 = arith.constant 0 : index
    %528 = vector.load %arg2[%c0_197, %c0_198] : memref<2x3xf32, #tpu.memory_space<vmem>>, vector<2x3xf32>
    %529 = math.log %526 : vector<2x3xf32>
    %cst_199 = arith.constant -1.000000e+02 : f32
    %530 = vector.broadcast %cst_199 : f32 to vector<2x3xf32>
    %531 = arith.maximumf %529, %530 : vector<2x3xf32>
    %cst_200 = arith.constant 1.000000e+00 : f32
    %532 = vector.broadcast %cst_200 : f32 to vector<2x3xf32>
    %533 = arith.subf %532, %526 : vector<2x3xf32>
    %534 = math.log %533 : vector<2x3xf32>
    %cst_201 = arith.constant -1.000000e+02 : f32
    %535 = vector.broadcast %cst_201 : f32 to vector<2x3xf32>
    %536 = arith.maximumf %534, %535 : vector<2x3xf32>
    %537 = arith.mulf %528, %531 : vector<2x3xf32>
    %cst_202 = arith.constant 1.000000e+00 : f32
    %538 = vector.broadcast %cst_202 : f32 to vector<2x3xf32>
    %539 = arith.subf %538, %528 : vector<2x3xf32>
    %540 = arith.mulf %539, %536 : vector<2x3xf32>
    %541 = arith.addf %537, %540 : vector<2x3xf32>
    %cst_203 = arith.constant 0.000000e+00 : f32
    %542 = vector.broadcast %cst_203 : f32 to vector<2x3xf32>
    %543 = arith.subf %542, %541 : vector<2x3xf32>
    %544 = vector.shape_cast %543 : vector<2x3xf32> to vector<1x2x3xf32>
    %cst_204 = arith.constant dense<0.000000e+00> : vector<1xf32>
    %545 = vector.multi_reduction <add>, %544, %cst_204 [1, 2] : vector<1x2x3xf32> to vector<1xf32>
    %546 = vector.shape_cast %545 : vector<1xf32> to vector<1x1x1xf32>
    %547 = vector.extract %546[0, 0, 0] : f32 from vector<1x1x1xf32>
    %548 = vector.broadcast %547 : f32 to vector<1x1xf32>
    %cst_205 = arith.constant 6.000000e+00 : f32
    %549 = vector.broadcast %cst_205 : f32 to vector<1x1xf32>
    %550 = arith.divf %548, %549 : vector<1x1xf32>
    %c0_206 = arith.constant 0 : index
    %c0_207 = arith.constant 0 : index
    %551 = vector.load %arg22[%c0_206, %c0_207] : memref<1x1xf32, #tpu.memory_space<vmem>>, vector<1x1xf32>
    tpu.vector_store %arg22[%c0_206, %c0_207], %550 {strides = array<i32>} : memref<1x1xf32, #tpu.memory_space<vmem>>, vector<1x1xf32>,
    return
  }
}

</mosaic_0001>

<bundles_post_ra>
// kernel: bert_classifier_forward.1
= control target key start
LH: loop header
LB: loop body
LE: loop exit
PB: predicated region body
PF: predicated region fallthrough
CT: control target
= control target key end

     0   :  { %s5535_s0 = inlined_call_operand.vmem [shape: f32[16,32], index: 0, kind: input, shape index: {}]   ;;  %s5536_s1 = inlined_call_operand.vmem [shape: f32[2,8], index: 1, kind: input, shape index: {}]   ;;  %s5537_s2 = inlined_call_operand.vmem [shape: f32[2,3], index: 2, kind: input, shape index: {}]   ;;  %s5538_s3 = inlined_call_operand.vmem [shape: f32[1,32], index: 3, kind: input, shape index: {}]   ;;  %s5539_s4 = inlined_call_operand.vmem [shape: f32[1,32], index: 4, kind: input, shape index: {}, may-alias: {4,18}]   ;;  %s5540_s5 = inlined_call_operand.vmem [shape: f32[2,32,96], index: 5, kind: input, shape index: {}]   ;;  %s5541_s6 = inlined_call_operand.vmem [shape: f32[2,1,96], index: 6, kind: input, shape index: {}]   ;;  %s5542_s7 = inlined_call_operand.vmem [shape: f32[2,32,32], index: 7, kind: input, shape index: {}]   ;;  %s5543_s8 = inlined_call_operand.vmem [shape: f32[2,1,32], index: 8, kind: input, shape index: {}, may-alias: {8,10,14,16}]   ;;  %s5544_s9 = inlined_call_operand.vmem [shape: f32[2,1,32], index: 9, kind: input, shape index: {}, may-alias: {9,15}]   ;;  %s5545_s10 = inlined_call_operand.vmem [shape: f32[2,1,32], index: 10, kind: input, shape index: {}, may-alias: {8,10,14,16}]   ;;  %s5546_s11 = inlined_call_operand.vmem [shape: f32[2,32,64], index: 11, kind: input, shape index: {}]   ;;  %s5547_s12 = inlined_call_operand.vmem [shape: f32[2,1,64], index: 12, kind: input, shape index: {}]   ;;  %s5548_s13 = inlined_call_operand.vmem [shape: f32[2,64,32], index: 13, kind: input, shape index: {}]   ;;  %s5549_s14 = inlined_call_operand.vmem [shape: f32[2,1,32], index: 14, kind: input, shape index: {}, may-alias: {8,10,14,16}]   ;;  %s5550_s15 = inlined_call_operand.vmem [shape: f32[2,1,32], index: 15, kind: input, shape index: {}, may-alias: {9,15}]   ;;  %s5551_s16 = inlined_call_operand.vmem [shape: f32[2,1,32], index: 16, kind: input, shape index: {}, may-alias: {8,10,14,16}]   ;;  %s5552_s17 = inlined_call_operand.vmem [shape: f32[32,32], index: 17, kind: input, shape index: {}]   ;;  %s5553_s18 = inlined_call_operand.vmem [shape: f32[1,32], index: 18, kind: input, shape index: {}, may-alias: {4,18}]   ;;  %s5554_s19 = inlined_call_operand.vmem [shape: f32[32,3], index: 19, kind: input, shape index: {}]   ;;  %s5555_s20 = inlined_call_operand.vmem [shape: f32[1,3], index: 20, kind: input, shape index: {}]   ;;  %s5556_s21 = inlined_call_operand.hbm [shape: f32[2,3], index: 21, kind: output, shape index: {0}]   ;;  %s5557_s22 = inlined_call_operand.hbm [shape: f32[1,1], index: 22, kind: output, shape index: {1}]  }
   0x1   :  { %5579 = sst [smem:[#allocation8_spill]] %s5535_s0 }
   0x2   :  { %5580 = sst [smem:[#allocation9_spill]] %s5536_s1 }
   0x3   :  { %5581 = sst [smem:[#allocation10_spill]] %s5537_s2 }
   0x4   :  { %5582 = sst [smem:[#allocation11_spill]] %s5538_s3 }
   0x5   :  { %5583 = sst [smem:[#allocation12_spill]] %s5539_s4 }
   0x6   :  { %5584 = sst [smem:[#allocation13_spill]] %s5540_s5 }
   0x7   :  { %5585 = sst [smem:[#allocation14_spill]] %s5541_s6 }
   0x8   :  { %28 = vsyncpa [#allocation3], 0  ;;  %s5586_s29 = sld [smem:[#allocation8_spill]]  ;;  %vm76_vm0 = vcmask 261120  }
   0xe   :  { %v72_v0 = vld [vmem:[%s5586_s29] sm:$0xff]  ;;  %v73_v1 = vld [vmem:[%s5586_s29 + $0x8] sm:$0xff] }
   0xf   :  { %29 = vsyncpa [#allocation5], 0  ;;  %v77_v2 = vsel %vm76_vm0, %v72_v0, 0.0  ;;  %v80_v3 = vsel %vm76_vm0, %v73_v1, 0.0  ;;  %s5587_s1 = sld [smem:[#allocation13_spill]]  ;;  %v4748_v34 = vmov 0.0   ;;  %v215_v56 = vlaneseq }
  0x10   :  { %78 = vadd.xlane.f32.xlu0 %v77_v2  ;;  %s5588_s28 = sld [smem:[#allocation11_spill]]  ;;  %4307 = vmatprep.subr.mxu1 %v4748_v34  ;;  %vm4749_vm1 = vmmov 0   ;;  %s4750_s24 = smov 88   ;;  %vm222_vm2 = vcmask 64512   ;;  %vm893_vm3 = vcmask 130048   ;;  %vm895_vm4 = vcmask 195584  }
  0x11   :  { %s5589_s4 = sld [smem:[#allocation12_spill]]  ;;  %4309 = vmatprep.mubr.msk.f32.mxu1 %vm4749_vm1, %v4748_v34  ;;  %s4751_s6 = smov 96   ;;  %v216_v57 = vshrl.u32 %v215_v56, 7  ;;  %vm1839_vm5 = vcmask 523264   ;;  %vm3816_vm6 = vcmask 1040384   ;;  %vm3993_vm7 = vcmask 17408  }
  0x12   :  { %s5590_s5 = sld [smem:[#allocation14_spill]]  ;;  %s4752_s25 = smov 112  }
  0x13   :  { %s4753_s26 = smov 120   ;;  %s5573_s2 = smov 104   ;;  %v217_v58 = vsub.s32 0, %v216_v57 }
  0x14   :  { %81 = vadd.xlane.f32.xlu0 %v80_v3  ;;  %s5571_s27 = smov 80   ;;  %s5569_s3 = smov 72  }
  0x15   :  { %v124_v14 = vld [vmem:[%s5587_s1 + $0x18] sm:$0xff]  ;;  %v123_v15 = vld [vmem:[%s5587_s1 + $0x10] sm:$0xff]  ;;  %v122_v16 = vld [vmem:[%s5587_s1 + $0x8] sm:$0xff]  ;;  %s5591_s30 = sld [smem:[#allocation9_spill]]  ;;  %s5565_s0 = smov 48  }
  0x16   :  { %4296 = vmatprep.subr.mxu0 %v124_v14  ;;  %v121_v17 = vld [vmem:[%s5587_s1] sm:$0xff]  ;;  %s5563_s23 = smov 40   ;;  %s4761_s29 = smov 8  }
  0x17   :  { %4297 = vmatpush3.msra.mxu0 %v124_v14  ;;  %v4051_v25 = vld [vmem:[%s5588_s28] ss:$0 sm:$0xff]  ;;  %s5561_s28 = smov 56  }
  0x18   :  { %4298 = vmatprep.subr.mxu0 %v123_v15  ;;  %v4052_v27 = vld [vmem:[%s5589_s4] ss:$0 sm:$0xff]  ;;  %s5567_s4 = smov 64  }
  0x19   :  { %4299 = vmatpush3.msra.mxu0 %v123_v15  ;;  %v4053_v36 = vld [vmem:[%s5590_s5] ss:$0 sm:$0xff] }
  0x1a   :  { %4300 = vmatprep.subr.mxu0 %v122_v16 }
  0x1b   :  { %4301 = vmatpush3.msra.mxu0 %v122_v16  ;;  %v120_v59 = vld [vmem:[%s5591_s30] sm:$0x3]  ;;  %s5575_s30 = smov 24  }
  0x1c   :  { %4302 = vmatprep.subr.mxu0 %v121_v17  ;;  %v4994_v60 = vrot.slane %v120_v59, %v217_v58 }
  0x1d   :  { %4303 = vmatpush3.msra.mxu0 %v121_v17 }
  0x1e   :  { %4317 = vmatprep.subr.mxu0 %v4748_v34 }
  0x99   :  { %v79_v4 = vpop.xlane.xlu0 %78 }
  0x9a   :  { %v84_v5 = vmul.f32 0.03125, %v79_v4 }
  0x9c   :  { %v86_v6 = vsub.f32 %v72_v0, %v84_v5 }
  0x9d   :  { %v82_v7 = vpop.xlane.xlu0 %81 }
  0x9e   :  { %v85_v8 = vmul.f32 0.03125, %v82_v7  ;;  %v88_v9 = vmul.f32 %v86_v6, %v86_v6  ;;  %v899_v7 = vsub.s32 1, %v216_v57 }
  0xa0   :  { %v87_v10 = vsub.f32 %v73_v1, %v85_v8  ;;  %v90_v11 = vsel %vm76_vm0, %v88_v9, 0.0 }
  0xa1   :  { %91 = vadd.xlane.f32.xlu1 %v90_v11 }
  0xa2   :  { %v89_v12 = vmul.f32 %v87_v10, %v87_v10 }
  0xa4   :  { %v93_v13 = vsel %vm76_vm0, %v89_v12, 0.0  ;;  %v5006_v12 = vrot.slane %v120_v59, %v899_v7 }
  0xa5   :  { %94 = vadd.xlane.f32.xlu1 %v93_v13 }
 0x12a   :  { %v92_v18 = vpop.xlane.xlu1 %91 }
 0x12b   :  { %v96_v19 = vmul.f32 0.03125, %v92_v18 }
 0x12d   :  { %v98_v20 = vadd.f32 1e-12, %v96_v19 }
 0x12e   :  { %v95_v21 = vpop.xlane.xlu1 %94 }
 0x12f   :  { %4602 = vrsqrt.f32 %v98_v20  ;;  %v97_v22 = vmul.f32 0.03125, %v95_v21 }
 0x131   :  { %v99_v23 = vadd.f32 1e-12, %v97_v22 }
 0x133   :  { %4604 = vrsqrt.f32 %v99_v23 }
 0x13c   :  { %v4603_v24 = vpop.eup %4602 }
 0x13d   :  { %v102_v26 = vmul.f32 %v4603_v24, %v86_v6 }
 0x13f   :  { %v110_v28 = vmul.f32 %v4051_v25, %v102_v26 }
 0x140   :  { %v4605_v29 = vpop.eup %4604 }
 0x141   :  { %v103_v30 = vmul.f32 %v4605_v29, %v87_v10  ;;  %v4909_v31 = vadd.f32 %v4052_v27, %v110_v28 }
 0x143   :  { %v111_v32 = vmul.f32 %v4051_v25, %v103_v30  ;;  %4304 = vmatprep.mubr.msk.f32.mxu0 %vm76_vm0, %v4909_v31 }
 0x145   :  { %v4913_v33 = vadd.f32 %v4052_v27, %v111_v32 }
 0x147   :  { %4305 = vmatmul.mubr.msk.f32.vlgmr.msra.gmra.mxu0 %vm76_vm0, %v4913_v33 }
 0x148   :  { %4319 = vmatprep.mubr.msk.f32.mxu0 %vm4749_vm1, %v4748_v34 }
 0x207   :  { %v4306_v35 = vpop.f32.mrf.mxu0 }
 0x208   :  { %v4938_v40 = vadd.f32 %v4306_v35, %v4053_v36 }
 0x209   :  { %v204_v37 = vpop.f32.mrf.mxu0 }
 0x20a   :  { %v4926_v38 = vadd.f32 %v4053_v36, %v204_v37  ;;  %v214_v41 = vmul.f32 0.35355338, %v4938_v40 }
 0x20c   :  { %387 = vrot.lane.b32.xlu1 %v4926_v38, %s4750_s24  ;;  %220 = vrot.lane.b32.xlu0 %v4926_v38, %s4751_s6  ;;  %v213_v39 = vmul.f32 0.35355338, %v4926_v38 }
 0x210   :  { %550 = vrot.lane.b32.xlu0 %v213_v39, %s4752_s25  ;;  %385 = vrot.lane.b32.xlu1 %v213_v39, %s4753_s26 }
 0x214   :  { %715 = vrot.lane.b32.xlu0 %v213_v39, %s5573_s2  ;;  %552 = vrot.lane.b32.xlu1 %v4926_v38, %s5571_s27 }
 0x218   :  { %1068 = vrot.lane.b32.xlu0 %v4938_v40, %s4750_s24  ;;  %717 = vrot.lane.b32.xlu1 %v4926_v38, %s5569_s3 }
 0x21c   :  { %1233 = vrot.lane.b32.xlu0 %v4938_v40, %s5571_s27  ;;  %902 = vrot.lane.b32.xlu1 %v4938_v40, %s4751_s6 }
 0x220   :  { %1398 = vrot.lane.b32.xlu0 %v4938_v40, %s5569_s3  ;;  %1066 = vrot.lane.b32.xlu1 %v214_v41, %s4753_s26 }
 0x224   :  { %1231 = vrot.lane.b32.xlu1 %v214_v41, %s4752_s25 }
 0x228   :  { %1396 = vrot.lane.b32.xlu1 %v214_v41, %s5573_s2  ;;  %s5593_s2 = smov 80  }
 0x27e   :  { %v388_v42 = vpop.permute.xlu1 %387  ;;  %v221_v43 = vpop.permute.xlu0 %220 }
 0x27f   :  { %4308 = vmatpush3.xpose.msk.msra.mxu1 %vm222_vm2, %v221_v43  ;;  %4318 = vmatpush3.xpose.msk.msra.mxu0 %vm222_vm2, %v388_v42 }
 0x280   :  { %4327 = vmatprep.subr.mxu0 %v4748_v34  ;;  %4312 = vmatprep.subr.mxu1 %v4748_v34 }
 0x282   :  { %v551_v44 = vpop.permute.xlu0 %550  ;;  %v386_v45 = vpop.permute.xlu1 %385  ;;  %4310 = vmatmul.mubr.msk.f32.vlgmr.msra.gmra.mxu1 %vm222_vm2, %v213_v39 }
 0x283   :  { %4320 = vmatmul.mubr.msk.f32.vlgmr.msra.gmra.mxu0 %vm222_vm2, %v386_v45  ;;  %4314 = vmatprep.mubr.msk.f32.mxu1 %vm4749_vm1, %v4748_v34 }
 0x284   :  { %4329 = vmatprep.mubr.msk.f32.mxu0 %vm4749_vm1, %v4748_v34 }
 0x286   :  { %v553_v46 = vpop.permute.xlu1 %552  ;;  %v716_v47 = vpop.permute.xlu0 %715 }
 0x287   :  { %4328 = vmatpush3.xpose.msk.msra.mxu0 %vm222_vm2, %v553_v46 }
 0x288   :  { %4337 = vmatprep.subr.mxu0 %v4748_v34 }
 0x28a   :  { %4330 = vmatmul.mubr.msk.f32.vlgmr.msra.gmra.mxu0 %vm222_vm2, %v551_v44  ;;  %v718_v48 = vpop.permute.xlu1 %717  ;;  %v1069_v49 = vpop.permute.xlu0 %1068 }
 0x28b   :  { %4338 = vmatpush3.xpose.msk.msra.mxu0 %vm222_vm2, %v718_v48  ;;  %4339 = vmatprep.mubr.msk.f32.mxu0 %vm4749_vm1, %v4748_v34 }
 0x28c   :  { %4347 = vmatprep.subr.mxu0 %v4748_v34 }
 0x28e   :  { %4340 = vmatmul.mubr.msk.f32.vlgmr.msra.gmra.mxu0 %vm222_vm2, %v716_v47  ;;  %v903_v50 = vpop.permute.xlu1 %902  ;;  %v1234_v52 = vpop.permute.xlu0 %1233 }
 0x28f   :  { %4348 = vmatpush3.xpose.msk.msra.mxu0 %vm222_vm2, %v903_v50  ;;  %4349 = vmatprep.mubr.msk.f32.mxu0 %vm4749_vm1, %v4748_v34 }
 0x290   :  { %4357 = vmatprep.subr.mxu0 %v4748_v34 }
 0x292   :  { %4350 = vmatmul.mubr.msk.f32.vlgmr.msra.gmra.mxu0 %vm222_vm2, %v214_v41  ;;  %v1067_v51 = vpop.permute.xlu1 %1066  ;;  %v1399_v54 = vpop.permute.xlu0 %1398 }
 0x293   :  { %4358 = vmatpush3.xpose.msk.msra.mxu0 %vm222_vm2, %v1069_v49  ;;  %4359 = vmatprep.mubr.msk.f32.mxu0 %vm4749_vm1, %v4748_v34 }
 0x294   :  { %4367 = vmatprep.subr.mxu0 %v4748_v34 }
 0x296   :  { %4360 = vmatmul.mubr.msk.f32.vlgmr.msra.gmra.mxu0 %vm222_vm2, %v1067_v51  ;;  %v1232_v53 = vpop.permute.xlu1 %1231 }
 0x297   :  { %4368 = vmatpush3.xpose.msk.msra.mxu0 %vm222_vm2, %v1234_v52  ;;  %4369 = vmatprep.mubr.msk.f32.mxu0 %vm4749_vm1, %v4748_v34 }
 0x298   :  { %4377 = vmatprep.subr.mxu0 %v4748_v34 }
 0x29a   :  { %4370 = vmatmul.mubr.msk.f32.vlgmr.msra.gmra.mxu0 %vm222_vm2, %v1232_v53  ;;  %v1397_v55 = vpop.permute.xlu1 %1396 }
 0x29b   :  { %4378 = vmatpush3.xpose.msk.msra.mxu0 %vm222_vm2, %v1399_v54  ;;  %4379 = vmatprep.mubr.msk.f32.mxu0 %vm4749_vm1, %v4748_v34 }
 0x29e   :  { %4380 = vmatmul.mubr.msk.f32.vlgmr.msra.gmra.mxu0 %vm222_vm2, %v1397_v55 }
 0x342   :  { %v294_v61 = vpop.f32.mrf.mxu1 }
 0x343   :  { %v295_v62 = vadd.f32 %v294_v61, %v4994_v60  ;;  %v459_v63 = vpop.f32.mrf.mxu0 }
 0x344   :  { %v460_v0 = vadd.f32 %v459_v63, %v4994_v60  ;;  %v4311_v1 = vpop.f32.mrf.mxu1 }
 0x345   :  { %v4321_v2 = vpop.f32.mrf.mxu0  ;;  %v298_v3 = vsel %vm222_vm2, %v295_v62, -inf }
 0x346   :  { %299 = vmax.xlane.f32.xlu0 %v298_v3  ;;  %v463_v4 = vsel %vm222_vm2, %v460_v0, -inf }
 0x347   :  { %464 = vmax.xlane.f32.xlu1 %v463_v4 }
 0x34a   :  { %v624_v5 = vpop.f32.mrf.mxu0 }
 0x34b   :  { %v5001_v6 = vadd.f32 %v624_v5, %v4994_v60 }
 0x34c   :  { %v4331_v8 = vpop.f32.mrf.mxu0 }
 0x34d   :  { %v628_v9 = vsel %vm222_vm2, %v5001_v6, -inf }
 0x34e   :  { %v789_v10 = vpop.f32.mrf.mxu0  ;;  %629 = vmax.xlane.f32.xlu0 %v628_v9 }
 0x34f   :  { %v790_v11 = vadd.f32 %v789_v10, %v4994_v60 }
 0x350   :  { %v4341_v13 = vpop.f32.mrf.mxu0 }
 0x351   :  { %v793_v14 = vsel %vm222_vm2, %v790_v11, -inf }
 0x352   :  { %v975_v15 = vpop.f32.mrf.mxu0  ;;  %794 = vmax.xlane.f32.xlu0 %v793_v14 }
 0x353   :  { %v976_v16 = vadd.f32 %v975_v15, %v5006_v12 }
 0x354   :  { %v4351_v17 = vpop.f32.mrf.mxu0 }
 0x355   :  { %v979_v18 = vsel %vm222_vm2, %v976_v16, -inf }
 0x356   :  { %v1140_v19 = vpop.f32.mrf.mxu0  ;;  %980 = vmax.xlane.f32.xlu0 %v979_v18 }
 0x357   :  { %v1141_v20 = vadd.f32 %v1140_v19, %v5006_v12 }
 0x358   :  { %v4361_v21 = vpop.f32.mrf.mxu0 }
 0x359   :  { %v1144_v22 = vsel %vm222_vm2, %v1141_v20, -inf }
 0x35a   :  { %1145 = vmax.xlane.f32.xlu1 %v1144_v22  ;;  %v1305_v23 = vpop.f32.mrf.mxu0 }
 0x35b   :  { %v1306_v24 = vadd.f32 %v1305_v23, %v5006_v12 }
 0x35c   :  { %v4371_v25 = vpop.f32.mrf.mxu0 }
 0x35d   :  { %v1309_v26 = vsel %vm222_vm2, %v1306_v24, -inf }
 0x35e   :  { %v1470_v27 = vpop.f32.mrf.mxu0  ;;  %1310 = vmax.xlane.f32.xlu0 %v1309_v26 }
 0x35f   :  { %v1471_v29 = vadd.f32 %v1470_v27, %v5006_v12 }
 0x360   :  { %v4381_v28 = vpop.f32.mrf.mxu0 }
 0x361   :  { %v1474_v30 = vsel %vm222_vm2, %v1471_v29, -inf }
 0x36b   :  { %309 = vrot.lane.b32.xlu1 %v4926_v38, %s5567_s4 }
 0x38f   :  { %1475 = vmax.xlane.f32.xlu1 %v1474_v30 }
 0x3a0   :  { %639 = vrot.lane.b32.xlu1 %v4926_v38, %s5565_s0 }
 0x3a4   :  { %804 = vrot.lane.b32.xlu1 %v4926_v38, %s5563_s23 }
 0x3a8   :  { %990 = vrot.lane.b32.xlu1 %v4938_v40, %s5567_s4  ;;  %s5577_s4 = smov 16  }
 0x3cf   :  { %v300_v32 = vpop.xlane.xlu0 %299 }
 0x3d0   :  { %v301_v35 = vsub.f32 %v295_v62, %v300_v32  ;;  %v465_v36 = vpop.xlane.xlu1 %464 }
 0x3d1   :  { %v466_v37 = vsub.f32 %v460_v0, %v465_v36 }
 0x3d2   :  { %v302_v39 = vmul.f32 1.442695, %v301_v35 }
 0x3d3   :  { %v467_v41 = vmul.f32 1.442695, %v466_v37 }
 0x3d4   :  { %4606 = vpow2.f32 %v302_v39 }
 0x3d5   :  { %4608 = vpow2.f32 %v467_v41 }
 0x3d7   :  { %v630_v42 = vpop.xlane.xlu0 %629 }
 0x3d8   :  { %v631_v54 = vsub.f32 %v5001_v6, %v630_v42 }
 0x3da   :  { %v632_v56 = vmul.f32 1.442695, %v631_v54  ;;  %v1579_v54 = vld [vmem:[%s5542_s7 + $0x18] sm:$0xff] }
 0x3db   :  { %v795_v43 = vpop.xlane.xlu0 %794  ;;  %4387 = vmatprep.subr.mxu0 %v1579_v54 }
 0x3dc   :  { %v796_v44 = vsub.f32 %v790_v11, %v795_v43  ;;  %4388 = vmatpush3.msra.mxu0 %v1579_v54 }
 0x3de   :  { %v797_v45 = vmul.f32 1.442695, %v796_v44 }
 0x3df   :  { %v981_v55 = vpop.xlane.xlu0 %980 }
 0x3e0   :  { %4610 = vpow2.f32 %v797_v45  ;;  %v982_v57 = vsub.f32 %v976_v16, %v981_v55  ;;  %v1578_v55 = vld [vmem:[%s5542_s7 + $0x10] sm:$0xff] }
 0x3e1   :  { %v4607_v46 = vpop.eup %4606  ;;  %4612 = vpow2.f32 %v632_v56  ;;  %4389 = vmatprep.subr.mxu0 %v1578_v55 }
 0x3e2   :  { %v5025_v47 = vpop.eup %4608  ;;  %v304_v48 = vsel %vm222_vm2, %v4607_v46, 0.0  ;;  %v983_v59 = vmul.f32 1.442695, %v982_v57  ;;  %4390 = vmatpush3.msra.mxu0 %v1578_v55 }
 0x3e3   :  { %v1146_v49 = vpop.xlane.xlu1 %1145  ;;  %305 = vadd.xlane.f32.xlu0 %v304_v48  ;;  %v469_v50 = vsel %vm222_vm2, %v5025_v47, 0.0 }
 0x3e4   :  { %470 = vadd.xlane.f32.xlu1 %v469_v50  ;;  %4614 = vpow2.f32 %v983_v59  ;;  %v1147_v62 = vsub.f32 %v1141_v20, %v1146_v49  ;;  %v1576_v59 = vld [vmem:[%s5542_s7] sm:$0xff] }
 0x3e6   :  { %v1148_v0 = vmul.f32 1.442695, %v1147_v62 }
 0x3e7   :  { %v310_v51 = vpop.permute.xlu1 %309  ;;  %v1311_v58 = vpop.xlane.xlu0 %1310 }
 0x3e8   :  { %4313 = vmatpush3.msra.mxu1 %v310_v51  ;;  %v1312_v61 = vsub.f32 %v1306_v24, %v1311_v58  ;;  %v1577_v58 = vld [vmem:[%s5542_s7 + $0x8] sm:$0xff] }
 0x3e9   :  { %4322 = vmatprep.subr.mxu1 %v4748_v34  ;;  %4391 = vmatprep.subr.mxu0 %v1577_v58 }
 0x3ea   :  { %v1313_v63 = vmul.f32 1.442695, %v1312_v61  ;;  %4392 = vmatpush3.msra.mxu0 %v1577_v58 }
 0x3eb   :  { %4393 = vmatprep.subr.mxu0 %v1576_v59 }
 0x3ec   :  { %4616 = vpow2.f32 %v1313_v63  ;;  %4394 = vmatpush3.msra.mxu0 %v1576_v59  ;;  %v1831_v59 = vld [vmem:[%s5548_s13 + $0x38] sm:$0xff] }
 0x3ed   :  { %v5031_v52 = vpop.eup %4610  ;;  %4618 = vpow2.f32 %v1148_v0  ;;  %4409 = vmatprep.subr.mxu0 %v1831_v59 }
 0x3ee   :  { %v799_v53 = vsel %vm222_vm2, %v5031_v52, 0.0  ;;  %v4613_v1 = vpop.eup %4612 }
 0x3ef   :  { %800 = vadd.xlane.f32.xlu1 %v799_v53 }
 0x3f1   :  { %v5041_v2 = vpop.eup %4614 }
 0x3f2   :  { %v985_v6 = vsel %vm222_vm2, %v5041_v2, 0.0 }
 0x3f9   :  { %474 = vrot.lane.b32.xlu0 %v4926_v38, %s5561_s28  ;;  %v634_v38 = vsel %vm222_vm2, %v4613_v1, 0.0  ;;  %v5045_v7 = vpop.eup %4616 }
 0x3fa   :  { %v1315_v8 = vsel %vm222_vm2, %v5045_v7, 0.0  ;;  %v4619_v9 = vpop.eup %4618 }
 0x3fb   :  { %v1150_v10 = vsel %vm222_vm2, %v4619_v9, 0.0 }
 0x400   :  { %1155 = vrot.lane.b32.xlu1 %v4938_v40, %s5561_s28 }
 0x418   :  { %v1476_v3 = vpop.xlane.xlu1 %1475  ;;  %635 = vadd.xlane.f32.xlu0 %v634_v38 }
 0x419   :  { %v1477_v4 = vsub.f32 %v1471_v29, %v1476_v3 }
 0x41b   :  { %v1478_v5 = vmul.f32 1.442695, %v1477_v4 }
 0x41c   :  { %986 = vadd.xlane.f32.xlu0 %v985_v6  ;;  %v640_v14 = vpop.permute.xlu1 %639 }
 0x41d   :  { %4620 = vpow2.f32 %v1478_v5 }
 0x420   :  { %1316 = vadd.xlane.f32.xlu0 %v1315_v8  ;;  %v805_v15 = vpop.permute.xlu1 %804 }
 0x424   :  { %1151 = vadd.xlane.f32.xlu1 %v1150_v10  ;;  %v991_v16 = vpop.permute.xlu1 %990 }
 0x42a   :  { %v5050_v11 = vpop.eup %4620 }
 0x42b   :  { %v1480_v13 = vsel %vm222_vm2, %v5050_v11, 0.0 }
 0x42c   :  { %1481 = vadd.xlane.f32.xlu0 %v1480_v13 }
 0x435   :  { %1485 = vrot.lane.b32.xlu1 %v4938_v40, %s5563_s23  ;;  %s5599_s23 = smov 16  }
 0x442   :  { %1320 = vrot.lane.b32.xlu0 %v4938_v40, %s5565_s0 }
 0x46c   :  { %v306_v17 = vpop.xlane.xlu0 %305 }
 0x46d   :  { %4622 = vrcp.f32 %v306_v17  ;;  %v471_v18 = vpop.xlane.xlu1 %470 }
 0x46e   :  { %4624 = vrcp.f32 %v471_v18  ;;  %v4080_v18 = vld [vmem:[%s5543_s8] ss:$0 sm:$0xff] }
 0x470   :  { %v475_v22 = vpop.permute.xlu0 %474 }
 0x478   :  { %v801_v23 = vpop.xlane.xlu1 %800 }
 0x47a   :  { %v4623_v19 = vpop.eup %4622 }
 0x47b   :  { %v308_v20 = vmul.f32 %v4623_v19, %v4607_v46  ;;  %v4625_v21 = vpop.eup %4624 }
 0x47c   :  { %v473_v40 = vmul.f32 %v4625_v21, %v5025_v47  ;;  %v1156_v26 = vpop.permute.xlu1 %1155 }
 0x47d   :  { %4315 = vmatmul.mubr.msk.f32.vlgmr.msra.gmra.mxu1 %vm222_vm2, %v308_v20 }
 0x47e   :  { %4323 = vmatpush3.msra.mxu1 %v475_v22  ;;  %4324 = vmatprep.mubr.msk.f32.mxu1 %vm4749_vm1, %v4748_v34 }
 0x47f   :  { %4332 = vmatprep.subr.mxu1 %v4748_v34 }
 0x481   :  { %4325 = vmatmul.mubr.msk.f32.vlgmr.msra.gmra.mxu1 %vm222_vm2, %v473_v40 }
 0x482   :  { %4333 = vmatpush3.msra.mxu1 %v640_v14  ;;  %4334 = vmatprep.mubr.msk.f32.mxu1 %vm4749_vm1, %v4748_v34 }
 0x483   :  { %4342 = vmatprep.subr.mxu1 %v4748_v34 }
 0x4a1   :  { %v636_v24 = vpop.xlane.xlu0 %635 }
 0x4a2   :  { %4626 = vrcp.f32 %v636_v24 }
 0x4a3   :  { %4628 = vrcp.f32 %v801_v23 }
 0x4a5   :  { %v987_v25 = vpop.xlane.xlu0 %986 }
 0x4a6   :  { %4630 = vrcp.f32 %v987_v25 }
 0x4a9   :  { %v1317_v27 = vpop.xlane.xlu0 %1316 }
 0x4ad   :  { %v1152_v28 = vpop.xlane.xlu1 %1151 }
 0x4ae   :  { %4632 = vrcp.f32 %v1152_v28 }
 0x4af   :  { %v4627_v29 = vpop.eup %4626  ;;  %4634 = vrcp.f32 %v1317_v27 }
 0x4b0   :  { %v638_v30 = vmul.f32 %v4627_v29, %v4613_v1  ;;  %v4629_v32 = vpop.eup %4628 }
 0x4b1   :  { %v803_v35 = vmul.f32 %v4629_v32, %v5031_v52  ;;  %v1486_v46 = vpop.permute.xlu1 %1485 }
 0x4b2   :  { %4335 = vmatmul.mubr.msk.f32.vlgmr.msra.gmra.mxu1 %vm222_vm2, %v638_v30 }
 0x4b3   :  { %4343 = vmatpush3.msra.mxu1 %v805_v15  ;;  %4344 = vmatprep.mubr.msk.f32.mxu1 %vm4749_vm1, %v4748_v34  ;;  %v4631_v36 = vpop.eup %4630 }
 0x4b4   :  { %4352 = vmatprep.subr.mxu1 %v4748_v34  ;;  %v989_v39 = vmul.f32 %v4631_v36, %v5041_v2 }
 0x4b5   :  { %v1482_v37 = vpop.xlane.xlu0 %1481 }
 0x4b6   :  { %4636 = vrcp.f32 %v1482_v37  ;;  %4345 = vmatmul.mubr.msk.f32.vlgmr.msra.gmra.mxu1 %vm222_vm2, %v803_v35 }
 0x4b7   :  { %4353 = vmatpush3.msra.mxu1 %v991_v16  ;;  %4354 = vmatprep.mubr.msk.f32.mxu1 %vm4749_vm1, %v4748_v34 }
 0x4b8   :  { %4362 = vmatprep.subr.mxu1 %v4748_v34 }
 0x4b9   :  { %v1321_v44 = vpop.permute.xlu0 %1320 }
 0x4ba   :  { %4355 = vmatmul.mubr.msk.f32.vlgmr.msra.gmra.mxu1 %vm222_vm2, %v989_v39  ;;  %v1716_v39 = vld [vmem:[%s5546_s11 + $0x10] sm:$0xff] }
 0x4bb   :  { %v4633_v41 = vpop.eup %4632  ;;  %4363 = vmatpush3.msra.mxu1 %v1156_v26  ;;  %4364 = vmatprep.mubr.msk.f32.mxu1 %vm4749_vm1, %v4748_v34 }
 0x4bc   :  { %4372 = vmatprep.subr.mxu1 %v4748_v34  ;;  %v1154_v42 = vmul.f32 %v4633_v41, %v4619_v9  ;;  %v4635_v43 = vpop.eup %4634  ;;  %v1715_v41 = vld [vmem:[%s5546_s11 + $0x8] sm:$0xff] }
 0x4bd   :  { %v1319_v45 = vmul.f32 %v4635_v43, %v5045_v7 }
 0x4be   :  { %4365 = vmatmul.mubr.msk.f32.vlgmr.msra.gmra.mxu1 %vm222_vm2, %v1154_v42  ;;  %v1714_v42 = vld [vmem:[%s5546_s11] sm:$0xff] }
 0x4bf   :  { %4373 = vmatpush3.msra.mxu1 %v1321_v44  ;;  %4374 = vmatprep.mubr.msk.f32.mxu1 %vm4749_vm1, %v4748_v34 }
 0x4c0   :  { %4382 = vmatprep.subr.mxu1 %v4748_v34 }
 0x4c2   :  { %4375 = vmatmul.mubr.msk.f32.vlgmr.msra.gmra.mxu1 %vm222_vm2, %v1319_v45 }
 0x4c3   :  { %v4637_v47 = vpop.eup %4636  ;;  %4383 = vmatpush3.msra.mxu1 %v1486_v46  ;;  %4384 = vmatprep.mubr.msk.f32.mxu1 %vm4749_vm1, %v4748_v34 }
 0x4c4   :  { %v1484_v48 = vmul.f32 %v4637_v47, %v5050_v11 }
 0x4c6   :  { %4385 = vmatmul.mubr.msk.f32.vlgmr.msra.gmra.mxu1 %vm222_vm2, %v1484_v48 }
 0x53d   :  { %v381_v49 = vpop.f32.mrf.mxu1 }
 0x53f   :  { %v4316_v50 = vpop.f32.mrf.mxu1 }
 0x540   :  { %v4083_v50 = vld [vmem:[%s5544_s9] ss:$0 sm:$0xff] }
 0x541   :  { %v546_v51 = vpop.f32.mrf.mxu1 }
 0x542   :  { %881 = vrot.lane.b32.xlu0 %v546_v51, %s4761_s29 }
 0x543   :  { %v4326_v52 = vpop.f32.mrf.mxu1 }
 0x544   :  { %v4084_v52 = vld [vmem:[%s5545_s10] ss:$0 sm:$0xff] }
 0x572   :  { %v711_v53 = vpop.f32.mrf.mxu1 }
 0x573   :  { %885 = vrot.lane.b32.xlu1 %v711_v53, %s5577_s4 }
 0x574   :  { %v4336_v56 = vpop.f32.mrf.mxu1 }
 0x576   :  { %v876_v57 = vpop.f32.mrf.mxu1 }
 0x577   :  { %889 = vrot.lane.b32.xlu1 %v876_v57, %s5575_s30 }
 0x578   :  { %v4346_v61 = vpop.f32.mrf.mxu1 }
 0x579   :  { %v1830_v61 = vld [vmem:[%s5548_s13 + $0x30] sm:$0xff] }
 0x57a   :  { %v1062_v62 = vpop.f32.mrf.mxu1 }
 0x57c   :  { %v4356_v63 = vpop.f32.mrf.mxu1 }
 0x57d   :  { %v1828_v63 = vld [vmem:[%s5548_s13 + $0x20] sm:$0xff] }
 0x57e   :  { %v1227_v0 = vpop.f32.mrf.mxu1 }
 0x57f   :  { %1562 = vrot.lane.b32.xlu0 %v1227_v0, %s4761_s29  ;;  %v1827_v0 = vld [vmem:[%s5548_s13 + $0x18] sm:$0xff] }
 0x580   :  { %v4366_v1 = vpop.f32.mrf.mxu1 }
 0x581   :  { %v1826_v1 = vld [vmem:[%s5548_s13 + $0x10] sm:$0xff] }
 0x582   :  { %v1392_v38 = vpop.f32.mrf.mxu1 }
 0x583   :  { %1566 = vrot.lane.b32.xlu0 %v1392_v38, %s5577_s4  ;;  %v1825_v38 = vld [vmem:[%s5548_s13 + $0x8] sm:$0xff] }
 0x584   :  { %v4376_v2 = vpop.f32.mrf.mxu1 }
 0x585   :  { %v1824_v2 = vld [vmem:[%s5548_s13] sm:$0xff] }
 0x586   :  { %v1557_v3 = vpop.f32.mrf.mxu1 }
 0x587   :  { %1570 = vrot.lane.b32.xlu1 %v1557_v3, %s5575_s30  ;;  %v4085_v3 = vld [vmem:[%s5547_s12] ss:$0 sm:$0xff]  ;;  %s5592_s30 = smov 104  }
 0x588   :  { %v4386_v4 = vpop.f32.mrf.mxu1 }
 0x5b4   :  { %v882_v5 = vpop.permute.xlu0 %881 }
 0x5b5   :  { %v892_v7 = vsel %vm222_vm2, %v381_v49, %v882_v5 }
 0x5e5   :  { %v886_v6 = vpop.permute.xlu1 %885 }
 0x5e6   :  { %v894_v8 = vsel %vm893_vm3, %v892_v7, %v886_v6 }
 0x5e9   :  { %v890_v9 = vpop.permute.xlu1 %889 }
 0x5ea   :  { %v896_v10 = vsel %vm895_vm4, %v894_v8, %v890_v9 }
 0x5eb   :  { %4395 = vmatprep.mubr.msk.f32.mxu0 %vm76_vm0, %v896_v10 }
 0x5f1   :  { %v1563_v11 = vpop.permute.xlu0 %1562 }
 0x5f2   :  { %v1573_v14 = vsel %vm222_vm2, %v1062_v62, %v1563_v11  ;;  %v1829_v62 = vld [vmem:[%s5548_s13 + $0x28] sm:$0xff] }
 0x5f5   :  { %v1567_v13 = vpop.permute.xlu0 %1566 }
 0x5f6   :  { %v1574_v15 = vsel %vm893_vm3, %v1573_v14, %v1567_v13 }
 0x5f9   :  { %v1571_v16 = vpop.permute.xlu1 %1570 }
 0x5fa   :  { %v1575_v17 = vsel %vm895_vm4, %v1574_v15, %v1571_v16 }
 0x5fb   :  { %4396 = vmatmul.mubr.msk.f32.vlgmr.msra.gmra.mxu0 %vm76_vm0, %v1575_v17 }
 0x5fc   :  { %4410 = vmatpush3.msra.mxu0 %v1831_v59  ;;  %v4091_v59 = vld [vmem:[%s5550_s15] ss:$0 sm:$0xff] }
 0x5fd   :  { %4411 = vmatprep.subr.mxu0 %v1830_v61 }
 0x5fe   :  { %4412 = vmatpush3.msra.mxu0 %v1830_v61 }
 0x5ff   :  { %4413 = vmatprep.subr.mxu0 %v1829_v62 }
 0x600   :  { %4414 = vmatpush3.msra.mxu0 %v1829_v62 }
 0x601   :  { %4415 = vmatprep.subr.mxu0 %v1828_v63 }
 0x602   :  { %4416 = vmatpush3.msra.mxu0 %v1828_v63 }
 0x603   :  { %4417 = vmatprep.subr.mxu0 %v1827_v0 }
 0x604   :  { %4418 = vmatpush3.msra.mxu0 %v1827_v0 }
 0x605   :  { %4419 = vmatprep.subr.mxu0 %v1826_v1 }
 0x606   :  { %4420 = vmatpush3.msra.mxu0 %v1826_v1  ;;  %v4092_v1 = vld [vmem:[%s5551_s16] ss:$0 sm:$0xff] }
 0x607   :  { %4421 = vmatprep.subr.mxu0 %v1825_v38 }
 0x608   :  { %4422 = vmatpush3.msra.mxu0 %v1825_v38 }
 0x609   :  { %4423 = vmatprep.subr.mxu0 %v1824_v2 }
 0x60a   :  { %4424 = vmatpush3.msra.mxu0 %v1824_v2 }
 0x60b   :  { %4449 = vmatprep.subr.mxu0 %v4748_v34 }
 0x6bb   :  { %v4397_v19 = vpop.f32.mrf.mxu0 }
 0x6bc   :  { %v1665_v20 = vadd.f32 %v4397_v19, %v4080_v18 }
 0x6bd   :  { %v1659_v21 = vpop.f32.mrf.mxu0 }
 0x6be   :  { %v1660_v22 = vadd.f32 %v4080_v18, %v1659_v21  ;;  %v1669_v40 = vadd.f32 %v1665_v20, %v4913_v33 }
 0x6c0   :  { %v1675_v23 = vsel %vm76_vm0, %v1669_v40, 0.0  ;;  %v1668_v24 = vadd.f32 %v1660_v22, %v4909_v31  ;;  %v1717_v31 = vld [vmem:[%s5546_s11 + $0x18] sm:$0xff] }
 0x6c1   :  { %1676 = vadd.xlane.f32.xlu1 %v1675_v23  ;;  %4398 = vmatprep.subr.mxu1 %v1717_v31 }
 0x6c2   :  { %v1672_v25 = vsel %vm76_vm0, %v1668_v24, 0.0  ;;  %4399 = vmatpush3.msra.mxu1 %v1717_v31 }
 0x6c3   :  { %1673 = vadd.xlane.f32.xlu0 %v1672_v25  ;;  %4400 = vmatprep.subr.mxu1 %v1716_v39 }
 0x6c4   :  { %4401 = vmatpush3.msra.mxu1 %v1716_v39 }
 0x6c5   :  { %4402 = vmatprep.subr.mxu1 %v1715_v41 }
 0x6c6   :  { %4403 = vmatpush3.msra.mxu1 %v1715_v41 }
 0x6c7   :  { %4404 = vmatprep.subr.mxu1 %v1714_v42 }
 0x6c8   :  { %4405 = vmatpush3.msra.mxu1 %v1714_v42 }
 0x74a   :  { %v1677_v26 = vpop.xlane.xlu1 %1676 }
 0x74b   :  { %v1679_v27 = vmul.f32 0.03125, %v1677_v26  ;;  %v4088_v26 = vld [vmem:[%s5549_s14] ss:$0 sm:$0xff] }
 0x74c   :  { %v1674_v28 = vpop.xlane.xlu0 %1673 }
 0x74d   :  { %v1678_v29 = vmul.f32 0.03125, %v1674_v28  ;;  %v1681_v30 = vsub.f32 %v1669_v40, %v1679_v27 }
 0x74f   :  { %v1680_v32 = vsub.f32 %v1668_v24, %v1678_v29  ;;  %v1683_v37 = vmul.f32 %v1681_v30, %v1681_v30 }
 0x751   :  { %v1682_v35 = vmul.f32 %v1680_v32, %v1680_v32  ;;  %v1687_v33 = vsel %vm76_vm0, %v1683_v37, 0.0 }
 0x753   :  { %v1684_v36 = vsel %vm76_vm0, %v1682_v35, 0.0 }
 0x754   :  { %1685 = vadd.xlane.f32.xlu0 %v1684_v36 }
 0x758   :  { %1688 = vadd.xlane.f32.xlu0 %v1687_v33 }
 0x7dd   :  { %v1686_v43 = vpop.xlane.xlu0 %1685 }
 0x7de   :  { %v1690_v44 = vmul.f32 0.03125, %v1686_v43 }
 0x7e0   :  { %v1692_v45 = vadd.f32 1e-12, %v1690_v44 }
 0x7e1   :  { %v1689_v46 = vpop.xlane.xlu0 %1688 }
 0x7e2   :  { %4638 = vrsqrt.f32 %v1692_v45  ;;  %v1691_v47 = vmul.f32 0.03125, %v1689_v46 }
 0x7e4   :  { %v1693_v48 = vadd.f32 1e-12, %v1691_v47 }
 0x7e6   :  { %4640 = vrsqrt.f32 %v1693_v48  ;;  %v4096_v48 = vld [vmem:[%s5587_s1 + $0x38] sm:$0xff] }
 0x7e7   :  { %4428 = vmatprep.subr.mxu1 %v4096_v48 }
 0x7ef   :  { %v4639_v49 = vpop.eup %4638 }
 0x7f0   :  { %v1696_v51 = vmul.f32 %v4639_v49, %v1680_v32  ;;  %v4095_v49 = vld [vmem:[%s5587_s1 + $0x30] sm:$0xff] }
 0x7f2   :  { %v1704_v53 = vmul.f32 %v4083_v50, %v1696_v51  ;;  %v4093_v51 = vld [vmem:[%s5587_s1 + $0x20] sm:$0xff] }
 0x7f3   :  { %v4641_v54 = vpop.eup %4640 }
 0x7f4   :  { %v1697_v55 = vmul.f32 %v4641_v54, %v1681_v30  ;;  %v5144_v56 = vadd.f32 %v4084_v52, %v1704_v53 }
 0x7f6   :  { %v1705_v57 = vmul.f32 %v4083_v50, %v1697_v55  ;;  %4406 = vmatprep.mubr.msk.f32.mxu1 %vm76_vm0, %v5144_v56  ;;  %v4094_v50 = vld [vmem:[%s5587_s1 + $0x28] sm:$0xff] }
 0x7f8   :  { %v1713_v58 = vadd.f32 %v4084_v52, %v1705_v57 }
 0x7fa   :  { %4407 = vmatmul.mubr.msk.f32.vlgmr.msra.gmra.mxu1 %vm76_vm0, %v1713_v58 }
 0x7fb   :  { %4429 = vmatpush3.msra.mxu1 %v4096_v48 }
 0x7fc   :  { %4430 = vmatprep.subr.mxu1 %v4095_v49 }
 0x7fd   :  { %4431 = vmatpush3.msra.mxu1 %v4095_v49 }
 0x7fe   :  { %4432 = vmatprep.subr.mxu1 %v4094_v50 }
 0x7ff   :  { %4433 = vmatpush3.msra.mxu1 %v4094_v50 }
 0x800   :  { %4434 = vmatprep.subr.mxu1 %v4093_v51 }
 0x801   :  { %4435 = vmatpush3.msra.mxu1 %v4093_v51 }
 0x802   :  { %4439 = vmatprep.subr.mxu1 %v4748_v34 }
 0x8ba   :  { %v4408_v4 = vpop.f32.mrf.mxu1 }
 0x8bb   :  { %v1803_v5 = vadd.f32 %v4408_v4, %v4085_v3 }
 0x8bc   :  { %v1797_v6 = vpop.f32.mrf.mxu1 }
 0x8bd   :  { %v1807_v7 = vmul.f32 %v1803_v5, %v1803_v5  ;;  %v1798_v8 = vadd.f32 %v4085_v3, %v1797_v6 }
 0x8bf   :  { %v1809_v9 = vmul.f32 %v1807_v7, %v1803_v5  ;;  %v1806_v10 = vmul.f32 %v1798_v8, %v1798_v8 }
 0x8c1   :  { %v1811_v11 = vmul.f32 0.044715, %v1809_v9  ;;  %v1808_v13 = vmul.f32 %v1806_v10, %v1798_v8 }
 0x8c3   :  { %v1813_v14 = vadd.f32 %v1811_v11, %v1803_v5  ;;  %v1810_v15 = vmul.f32 0.044715, %v1808_v13 }
 0x8c5   :  { %v1815_v16 = vmul.f32 0.7978846, %v1813_v14  ;;  %v1812_v17 = vadd.f32 %v1810_v15, %v1798_v8 }
 0x8c7   :  { %4642 = vtanh.f32 %v1815_v16  ;;  %v1814_v18 = vmul.f32 0.7978846, %v1812_v17 }
 0x8c9   :  { %4644 = vtanh.f32 %v1814_v18 }
 0x8d4   :  { %v4643_v19 = vpop.eup %4642 }
 0x8d5   :  { %v1819_v20 = vadd.f32 1.0, %v4643_v19 }
 0x8d6   :  { %v4645_v21 = vpop.eup %4644 }
 0x8d7   :  { %v1818_v22 = vadd.f32 1.0, %v4645_v21  ;;  %v1821_v40 = vmul.f32 0.5, %v1819_v20 }
 0x8d9   :  { %v1820_v23 = vmul.f32 0.5, %v1818_v22  ;;  %v1823_v25 = vmul.f32 %v1821_v40, %v1803_v5  ;;  %v4098_v5 = vld [vmem:[%s5590_s5 + $0x1] ss:$0 sm:$0xff]  ;;  %s5594_s5 = smov 72  }
 0x8db   :  { %v1822_v24 = vmul.f32 %v1820_v23, %v1798_v8 }
 0x8dd   :  { %4425 = vmatprep.mubr.msk.f32.mxu0 %vm1839_vm5, %v1822_v24 }
 0x8de   :  { %4426 = vmatmul.mubr.msk.f32.vlgmr.msra.gmra.mxu0 %vm1839_vm5, %v1823_v25 }
 0x8df   :  { %4451 = vmatprep.mubr.msk.f32.mxu0 %vm4749_vm1, %v4748_v34 }
 0x99e   :  { %v4427_v27 = vpop.f32.mrf.mxu0 }
 0x99f   :  { %v1918_v28 = vadd.f32 %v4427_v27, %v4088_v26 }
 0x9a0   :  { %v1912_v29 = vpop.f32.mrf.mxu0 }
 0x9a1   :  { %v1913_v30 = vadd.f32 %v4088_v26, %v1912_v29  ;;  %v1922_v32 = vadd.f32 %v1918_v28, %v1713_v58 }
 0x9a3   :  { %v1928_v35 = vsel %vm76_vm0, %v1922_v32, 0.0  ;;  %v1921_v36 = vadd.f32 %v1913_v30, %v5144_v56 }
 0x9a4   :  { %1929 = vadd.xlane.f32.xlu1 %v1928_v35 }
 0x9a5   :  { %v1925_v37 = vsel %vm76_vm0, %v1921_v36, 0.0 }
 0x9a6   :  { %1926 = vadd.xlane.f32.xlu0 %v1925_v37 }
 0xa2d   :  { %v1930_v33 = vpop.xlane.xlu1 %1929 }
 0xa2e   :  { %v1932_v31 = vmul.f32 0.03125, %v1930_v33 }
 0xa2f   :  { %v1927_v39 = vpop.xlane.xlu0 %1926 }
 0xa30   :  { %v1934_v41 = vsub.f32 %v1922_v32, %v1932_v31  ;;  %v1931_v42 = vmul.f32 0.03125, %v1927_v39 }
 0xa32   :  { %v1933_v43 = vsub.f32 %v1921_v36, %v1931_v42  ;;  %v1936_v44 = vmul.f32 %v1934_v41, %v1934_v41 }
 0xa34   :  { %v1940_v45 = vsel %vm76_vm0, %v1936_v44, 0.0  ;;  %v1935_v46 = vmul.f32 %v1933_v43, %v1933_v43 }
 0xa35   :  { %1941 = vadd.xlane.f32.xlu1 %v1940_v45 }
 0xa36   :  { %v1937_v47 = vsel %vm76_vm0, %v1935_v46, 0.0 }
 0xa37   :  { %1938 = vadd.xlane.f32.xlu0 %v1937_v47 }
 0xabe   :  { %v1942_v52 = vpop.xlane.xlu1 %1941 }
 0xabf   :  { %v1944_v53 = vmul.f32 0.03125, %v1942_v52 }
 0xac0   :  { %v1939_v54 = vpop.xlane.xlu0 %1938 }
 0xac1   :  { %v1946_v55 = vadd.f32 1e-12, %v1944_v53  ;;  %v1943_v56 = vmul.f32 0.03125, %v1939_v54 }
 0xac3   :  { %4646 = vrsqrt.f32 %v1946_v55  ;;  %v1945_v57 = vadd.f32 1e-12, %v1943_v56 }
 0xac5   :  { %4648 = vrsqrt.f32 %v1945_v57 }
 0xad0   :  { %v4647_v58 = vpop.eup %4646 }
 0xad1   :  { %v1950_v61 = vmul.f32 %v4647_v58, %v1934_v41 }
 0xad2   :  { %v4649_v62 = vpop.eup %4648 }
 0xad3   :  { %v1949_v63 = vmul.f32 %v4649_v62, %v1933_v43  ;;  %v1958_v0 = vmul.f32 %v4091_v59, %v1950_v61 }
 0xad5   :  { %v1957_v38 = vmul.f32 %v4091_v59, %v1949_v63  ;;  %v5210_v3 = vadd.f32 %v4092_v1, %v1958_v0 }
 0xad7   :  { %v5208_v2 = vadd.f32 %v4092_v1, %v1957_v38 }
 0xad9   :  { %4436 = vmatprep.mubr.msk.f32.mxu1 %vm76_vm0, %v5208_v2 }
 0xada   :  { %4437 = vmatmul.mubr.msk.f32.vlgmr.msra.gmra.mxu1 %vm76_vm0, %v5210_v3 }
 0xadb   :  { %4441 = vmatprep.mubr.msk.f32.mxu1 %vm4749_vm1, %v4748_v34 }
 0xb9a   :  { %v4438_v4 = vpop.f32.mrf.mxu1 }
 0xb9b   :  { %v5233_v9 = vadd.f32 %v4438_v4, %v4098_v5 }
 0xb9c   :  { %v2052_v6 = vpop.f32.mrf.mxu1 }
 0xb9d   :  { %v5221_v7 = vadd.f32 %v4098_v5, %v2052_v6  ;;  %v2062_v10 = vmul.f32 0.35355338, %v5233_v9 }
 0xb9f   :  { %2230 = vrot.lane.b32.xlu1 %v5221_v7, %s4750_s24  ;;  %2064 = vrot.lane.b32.xlu0 %v5221_v7, %s4751_s6  ;;  %v2061_v8 = vmul.f32 0.35355338, %v5221_v7 }
 0xba3   :  { %2393 = vrot.lane.b32.xlu0 %v2061_v8, %s4752_s25  ;;  %2228 = vrot.lane.b32.xlu1 %v2061_v8, %s4753_s26 }
 0xba7   :  { %2558 = vrot.lane.b32.xlu0 %v2061_v8, %s5592_s30  ;;  %2395 = vrot.lane.b32.xlu1 %v5221_v7, %s5593_s2 }
 0xbab   :  { %2905 = vrot.lane.b32.xlu0 %v5233_v9, %s4750_s24  ;;  %2560 = vrot.lane.b32.xlu1 %v5221_v7, %s5594_s5  ;;  %s5595_s24 = smov 64  }
 0xbaf   :  { %3070 = vrot.lane.b32.xlu0 %v5233_v9, %s5593_s2  ;;  %2739 = vrot.lane.b32.xlu1 %v5233_v9, %s4751_s6  ;;  %s5596_s6 = smov 48  }
 0xbb3   :  { %3235 = vrot.lane.b32.xlu0 %v5233_v9, %s5594_s5  ;;  %2903 = vrot.lane.b32.xlu1 %v2062_v10, %s4753_s26  ;;  %s5598_s26 = smov 56   ;;  %s5600_s5 = smov 24  }
 0xbb7   :  { %3068 = vrot.lane.b32.xlu1 %v2062_v10, %s4752_s25  ;;  %s5597_s25 = smov 40  }
 0xbbb   :  { %3233 = vrot.lane.b32.xlu1 %v2062_v10, %s5592_s30 }
 0xc11   :  { %v2231_v11 = vpop.permute.xlu1 %2230  ;;  %v2065_v13 = vpop.permute.xlu0 %2064 }
 0xc12   :  { %4440 = vmatpush3.xpose.msk.msra.mxu1 %vm222_vm2, %v2065_v13  ;;  %4450 = vmatpush3.xpose.msk.msra.mxu0 %vm222_vm2, %v2231_v11 }
 0xc13   :  { %4459 = vmatprep.subr.mxu0 %v4748_v34  ;;  %4444 = vmatprep.subr.mxu1 %v4748_v34 }
 0xc15   :  { %v2394_v14 = vpop.permute.xlu0 %2393  ;;  %v2229_v15 = vpop.permute.xlu1 %2228  ;;  %4442 = vmatmul.mubr.msk.f32.vlgmr.msra.gmra.mxu1 %vm222_vm2, %v2061_v8 }
 0xc16   :  { %4452 = vmatmul.mubr.msk.f32.vlgmr.msra.gmra.mxu0 %vm222_vm2, %v2229_v15  ;;  %4446 = vmatprep.mubr.msk.f32.mxu1 %vm4749_vm1, %v4748_v34 }
 0xc17   :  { %4461 = vmatprep.mubr.msk.f32.mxu0 %vm4749_vm1, %v4748_v34 }
 0xc19   :  { %v2396_v16 = vpop.permute.xlu1 %2395  ;;  %v2559_v17 = vpop.permute.xlu0 %2558 }
 0xc1a   :  { %4460 = vmatpush3.xpose.msk.msra.mxu0 %vm222_vm2, %v2396_v16 }
 0xc1b   :  { %4469 = vmatprep.subr.mxu0 %v4748_v34 }
 0xc1d   :  { %4462 = vmatmul.mubr.msk.f32.vlgmr.msra.gmra.mxu0 %vm222_vm2, %v2394_v14  ;;  %v2561_v18 = vpop.permute.xlu1 %2560  ;;  %v2906_v19 = vpop.permute.xlu0 %2905 }
 0xc1e   :  { %4470 = vmatpush3.xpose.msk.msra.mxu0 %vm222_vm2, %v2561_v18  ;;  %4471 = vmatprep.mubr.msk.f32.mxu0 %vm4749_vm1, %v4748_v34 }
 0xc1f   :  { %4479 = vmatprep.subr.mxu0 %v4748_v34 }
 0xc21   :  { %4472 = vmatmul.mubr.msk.f32.vlgmr.msra.gmra.mxu0 %vm222_vm2, %v2559_v17  ;;  %v2740_v20 = vpop.permute.xlu1 %2739  ;;  %v3071_v22 = vpop.permute.xlu0 %3070 }
 0xc22   :  { %4480 = vmatpush3.xpose.msk.msra.mxu0 %vm222_vm2, %v2740_v20  ;;  %4481 = vmatprep.mubr.msk.f32.mxu0 %vm4749_vm1, %v4748_v34 }
 0xc23   :  { %4489 = vmatprep.subr.mxu0 %v4748_v34 }
 0xc25   :  { %4482 = vmatmul.mubr.msk.f32.vlgmr.msra.gmra.mxu0 %vm222_vm2, %v2062_v10  ;;  %v2904_v21 = vpop.permute.xlu1 %2903  ;;  %v3236_v23 = vpop.permute.xlu0 %3235 }
 0xc26   :  { %4490 = vmatpush3.xpose.msk.msra.mxu0 %vm222_vm2, %v2906_v19  ;;  %4491 = vmatprep.mubr.msk.f32.mxu0 %vm4749_vm1, %v4748_v34 }
 0xc27   :  { %4499 = vmatprep.subr.mxu0 %v4748_v34 }
 0xc29   :  { %4492 = vmatmul.mubr.msk.f32.vlgmr.msra.gmra.mxu0 %vm222_vm2, %v2904_v21  ;;  %v3069_v40 = vpop.permute.xlu1 %3068 }
 0xc2a   :  { %4500 = vmatpush3.xpose.msk.msra.mxu0 %vm222_vm2, %v3071_v22  ;;  %4501 = vmatprep.mubr.msk.f32.mxu0 %vm4749_vm1, %v4748_v34 }
 0xc2b   :  { %4509 = vmatprep.subr.mxu0 %v4748_v34 }
 0xc2d   :  { %4502 = vmatmul.mubr.msk.f32.vlgmr.msra.gmra.mxu0 %vm222_vm2, %v3069_v40  ;;  %v3234_v24 = vpop.permute.xlu1 %3233 }
 0xc2e   :  { %4510 = vmatpush3.xpose.msk.msra.mxu0 %vm222_vm2, %v3236_v23  ;;  %4511 = vmatprep.mubr.msk.f32.mxu0 %vm4749_vm1, %v4748_v34 }
 0xc31   :  { %4512 = vmatmul.mubr.msk.f32.vlgmr.msra.gmra.mxu0 %vm222_vm2, %v3234_v24 }
 0xcd5   :  { %v2137_v25 = vpop.f32.mrf.mxu1 }
 0xcd6   :  { %v2138_v26 = vadd.f32 %v2137_v25, %v4994_v60  ;;  %v2302_v27 = vpop.f32.mrf.mxu0 }
 0xcd7   :  { %v2303_v28 = vadd.f32 %v2302_v27, %v4994_v60  ;;  %v4443_v29 = vpop.f32.mrf.mxu1 }
 0xcd8   :  { %v4453_v30 = vpop.f32.mrf.mxu0  ;;  %v2141_v32 = vsel %vm222_vm2, %v2138_v26, -inf }
 0xcd9   :  { %2142 = vmax.xlane.f32.xlu0 %v2141_v32  ;;  %v2306_v35 = vsel %vm222_vm2, %v2303_v28, -inf }
 0xcda   :  { %2307 = vmax.xlane.f32.xlu1 %v2306_v35 }
 0xcdd   :  { %v2467_v36 = vpop.f32.mrf.mxu0 }
 0xcde   :  { %v5291_v37 = vadd.f32 %v2467_v36, %v4994_v60 }
 0xcdf   :  { %v4463_v33 = vpop.f32.mrf.mxu0 }
 0xce0   :  { %v2471_v31 = vsel %vm222_vm2, %v5291_v37, -inf }
 0xce1   :  { %v2632_v39 = vpop.f32.mrf.mxu0  ;;  %2472 = vmax.xlane.f32.xlu0 %v2471_v31 }
 0xce2   :  { %v2633_v41 = vadd.f32 %v2632_v39, %v4994_v60 }
 0xce3   :  { %v4473_v42 = vpop.f32.mrf.mxu0 }
 0xce4   :  { %v2636_v43 = vsel %vm222_vm2, %v2633_v41, -inf }
 0xce5   :  { %v2812_v44 = vpop.f32.mrf.mxu0  ;;  %2637 = vmax.xlane.f32.xlu0 %v2636_v43 }
 0xce6   :  { %v2813_v45 = vadd.f32 %v2812_v44, %v5006_v12 }
 0xce7   :  { %v4483_v46 = vpop.f32.mrf.mxu0 }
 0xce8   :  { %v2816_v47 = vsel %vm222_vm2, %v2813_v45, -inf }
 0xce9   :  { %v2977_v48 = vpop.f32.mrf.mxu0  ;;  %2817 = vmax.xlane.f32.xlu0 %v2816_v47 }
 0xcea   :  { %v2978_v49 = vadd.f32 %v2977_v48, %v5006_v12 }
 0xceb   :  { %v4493_v50 = vpop.f32.mrf.mxu0 }
 0xcec   :  { %v2981_v51 = vsel %vm222_vm2, %v2978_v49, -inf }
 0xced   :  { %2982 = vmax.xlane.f32.xlu1 %v2981_v51  ;;  %v3142_v52 = vpop.f32.mrf.mxu0 }
 0xcee   :  { %v3143_v60 = vadd.f32 %v3142_v52, %v5006_v12 }
 0xcef   :  { %v4503_v53 = vpop.f32.mrf.mxu0 }
 0xcf0   :  { %v3146_v54 = vsel %vm222_vm2, %v3143_v60, -inf }
 0xcf1   :  { %v3307_v55 = vpop.f32.mrf.mxu0  ;;  %3147 = vmax.xlane.f32.xlu0 %v3146_v54 }
 0xcf2   :  { %v3308_v57 = vadd.f32 %v3307_v55, %v5006_v12 }
 0xcf3   :  { %v4513_v56 = vpop.f32.mrf.mxu0 }
 0xcf4   :  { %v3311_v58 = vsel %vm222_vm2, %v3308_v57, -inf }
 0xcfe   :  { %2152 = vrot.lane.b32.xlu1 %v5221_v7, %s5595_s24 }
 0xd22   :  { %3312 = vmax.xlane.f32.xlu1 %v3311_v58 }
 0xd33   :  { %2482 = vrot.lane.b32.xlu1 %v5221_v7, %s5596_s6 }
 0xd37   :  { %2647 = vrot.lane.b32.xlu1 %v5221_v7, %s5597_s25 }
 0xd3b   :  { %2827 = vrot.lane.b32.xlu1 %v5233_v9, %s5595_s24 }
 0xd62   :  { %v2143_v59 = vpop.xlane.xlu0 %2142 }
 0xd63   :  { %v2144_v61 = vsub.f32 %v2138_v26, %v2143_v59  ;;  %v2308_v62 = vpop.xlane.xlu1 %2307 }
 0xd64   :  { %v2309_v63 = vsub.f32 %v2303_v28, %v2308_v62 }
 0xd65   :  { %v2145_v0 = vmul.f32 1.442695, %v2144_v61 }
 0xd66   :  { %v2310_v1 = vmul.f32 1.442695, %v2309_v63 }
 0xd67   :  { %4650 = vpow2.f32 %v2145_v0 }
 0xd68   :  { %4652 = vpow2.f32 %v2310_v1 }
 0xd6a   :  { %v2473_v12 = vpop.xlane.xlu0 %2472 }
 0xd6b   :  { %v2474_v17 = vsub.f32 %v5291_v37, %v2473_v12 }
 0xd6d   :  { %v2475_v19 = vmul.f32 1.442695, %v2474_v17 }
 0xd6e   :  { %v2638_v38 = vpop.xlane.xlu0 %2637 }
 0xd6f   :  { %v2639_v4 = vsub.f32 %v2633_v41, %v2638_v38 }
 0xd71   :  { %v2640_v5 = vmul.f32 1.442695, %v2639_v4 }
 0xd72   :  { %v2818_v18 = vpop.xlane.xlu0 %2817 }
 0xd73   :  { %4654 = vpow2.f32 %v2640_v5  ;;  %v2819_v20 = vsub.f32 %v2813_v45, %v2818_v18 }
 0xd74   :  { %v4651_v6 = vpop.eup %4650  ;;  %4656 = vpow2.f32 %v2475_v19  ;;  %v4126_v19 = vld [vmem:[%s5542_s7 + $0x28] sm:$0xff] }
 0xd75   :  { %v5313_v8 = vpop.eup %4652  ;;  %v2147_v10 = vsel %vm222_vm2, %v4651_v6, 0.0  ;;  %v2820_v22 = vmul.f32 1.442695, %v2819_v20  ;;  %v4125_v20 = vld [vmem:[%s5542_s7 + $0x20] sm:$0xff] }
 0xd76   :  { %v2983_v11 = vpop.xlane.xlu1 %2982  ;;  %2148 = vadd.xlane.f32.xlu0 %v2147_v10  ;;  %v2312_v13 = vsel %vm222_vm2, %v5313_v8, 0.0 }
 0xd77   :  { %2313 = vadd.xlane.f32.xlu1 %v2312_v13  ;;  %4658 = vpow2.f32 %v2820_v22  ;;  %v2984_v23 = vsub.f32 %v2978_v49, %v2983_v11 }
 0xd79   :  { %v2985_v25 = vmul.f32 1.442695, %v2984_v23 }
 0xd7a   :  { %v2153_v14 = vpop.permute.xlu1 %2152  ;;  %v3148_v21 = vpop.xlane.xlu0 %3147 }
 0xd7b   :  { %4445 = vmatpush3.msra.mxu1 %v2153_v14  ;;  %v3149_v40 = vsub.f32 %v3143_v60, %v3148_v21 }
 0xd7c   :  { %4454 = vmatprep.subr.mxu1 %v4748_v34 }
 0xd7d   :  { %v3150_v24 = vmul.f32 1.442695, %v3149_v40 }
 0xd7f   :  { %4660 = vpow2.f32 %v3150_v24 }
 0xd80   :  { %v5319_v15 = vpop.eup %4654  ;;  %4662 = vpow2.f32 %v2985_v25 }
 0xd81   :  { %v2642_v16 = vsel %vm222_vm2, %v5319_v15, 0.0  ;;  %v4657_v26 = vpop.eup %4656 }
 0xd82   :  { %2643 = vadd.xlane.f32.xlu1 %v2642_v16  ;;  %v4127_v16 = vld [vmem:[%s5542_s7 + $0x30] sm:$0xff] }
 0xd84   :  { %v5329_v27 = vpop.eup %4658 }
 0xd85   :  { %v2822_v32 = vsel %vm222_vm2, %v5329_v27, 0.0 }
 0xd8c   :  { %2317 = vrot.lane.b32.xlu0 %v5221_v7, %s5598_s26  ;;  %v2477_v7 = vsel %vm222_vm2, %v4657_v26, 0.0  ;;  %v5333_v35 = vpop.eup %4660 }
 0xd8d   :  { %v3152_v36 = vsel %vm222_vm2, %v5333_v35, 0.0  ;;  %v4663_v37 = vpop.eup %4662 }
 0xd8e   :  { %v2987_v33 = vsel %vm222_vm2, %v4663_v37, 0.0 }
 0xd93   :  { %2992 = vrot.lane.b32.xlu1 %v5233_v9, %s5598_s26 }
 0xdab   :  { %v3313_v28 = vpop.xlane.xlu1 %3312  ;;  %2478 = vadd.xlane.f32.xlu0 %v2477_v7 }
 0xdac   :  { %v3314_v29 = vsub.f32 %v3308_v57, %v3313_v28 }
 0xdae   :  { %v3315_v30 = vmul.f32 1.442695, %v3314_v29 }
 0xdaf   :  { %2823 = vadd.xlane.f32.xlu0 %v2822_v32  ;;  %v2483_v41 = vpop.permute.xlu1 %2482 }
 0xdb0   :  { %4664 = vpow2.f32 %v3315_v30 }
 0xdb3   :  { %3153 = vadd.xlane.f32.xlu0 %v3152_v36  ;;  %v2648_v42 = vpop.permute.xlu1 %2647 }
 0xdb7   :  { %2988 = vadd.xlane.f32.xlu1 %v2987_v33  ;;  %v2828_v43 = vpop.permute.xlu1 %2827 }
 0xdbd   :  { %v5338_v31 = vpop.eup %4664 }
 0xdbe   :  { %v3317_v39 = vsel %vm222_vm2, %v5338_v31, 0.0 }
 0xdbf   :  { %3318 = vadd.xlane.f32.xlu0 %v3317_v39 }
 0xdc8   :  { %3322 = vrot.lane.b32.xlu1 %v5233_v9, %s5597_s25 }
 0xdd5   :  { %3157 = vrot.lane.b32.xlu0 %v5233_v9, %s5596_s6 }
 0xdff   :  { %v2149_v44 = vpop.xlane.xlu0 %2148 }
 0xe00   :  { %4666 = vrcp.f32 %v2149_v44  ;;  %v2314_v45 = vpop.xlane.xlu1 %2313 }
 0xe01   :  { %4668 = vrcp.f32 %v2314_v45 }
 0xe03   :  { %v2318_v49 = vpop.permute.xlu0 %2317 }
 0xe0b   :  { %v2644_v50 = vpop.xlane.xlu1 %2643 }
 0xe0d   :  { %v4667_v46 = vpop.eup %4666 }
 0xe0e   :  { %v2151_v47 = vmul.f32 %v4667_v46, %v4651_v6  ;;  %v4669_v48 = vpop.eup %4668 }
 0xe0f   :  { %v2316_v9 = vmul.f32 %v4669_v48, %v5313_v8  ;;  %v2993_v60 = vpop.permute.xlu1 %2992 }
 0xe10   :  { %4447 = vmatmul.mubr.msk.f32.vlgmr.msra.gmra.mxu1 %vm222_vm2, %v2151_v47 }
 0xe11   :  { %4455 = vmatpush3.msra.mxu1 %v2318_v49  ;;  %4456 = vmatprep.mubr.msk.f32.mxu1 %vm4749_vm1, %v4748_v34 }
 0xe12   :  { %4464 = vmatprep.subr.mxu1 %v4748_v34 }
 0xe14   :  { %4457 = vmatmul.mubr.msk.f32.vlgmr.msra.gmra.mxu1 %vm222_vm2, %v2316_v9 }
 0xe15   :  { %4465 = vmatpush3.msra.mxu1 %v2483_v41  ;;  %4466 = vmatprep.mubr.msk.f32.mxu1 %vm4749_vm1, %v4748_v34 }
 0xe16   :  { %4474 = vmatprep.subr.mxu1 %v4748_v34 }
 0xe34   :  { %v2479_v51 = vpop.xlane.xlu0 %2478 }
 0xe35   :  { %4670 = vrcp.f32 %v2479_v51 }
 0xe36   :  { %4672 = vrcp.f32 %v2644_v50 }
 0xe38   :  { %v2824_v52 = vpop.xlane.xlu0 %2823 }
 0xe39   :  { %4674 = vrcp.f32 %v2824_v52 }
 0xe3c   :  { %v3154_v53 = vpop.xlane.xlu0 %3153 }
 0xe40   :  { %v2989_v54 = vpop.xlane.xlu1 %2988 }
 0xe41   :  { %4676 = vrcp.f32 %v2989_v54 }
 0xe42   :  { %v4671_v55 = vpop.eup %4670  ;;  %4678 = vrcp.f32 %v3154_v53 }
 0xe43   :  { %v2481_v56 = vmul.f32 %v4671_v55, %v4657_v26  ;;  %v4673_v57 = vpop.eup %4672 }
 0xe44   :  { %v2646_v58 = vmul.f32 %v4673_v57, %v5319_v15  ;;  %v3323_v4 = vpop.permute.xlu1 %3322  ;;  %v4128_v15 = vld [vmem:[%s5542_s7 + $0x38] sm:$0xff] }
 0xe45   :  { %4467 = vmatmul.mubr.msk.f32.vlgmr.msra.gmra.mxu1 %vm222_vm2, %v2481_v56  ;;  %4519 = vmatprep.subr.mxu0 %v4128_v15 }
 0xe46   :  { %4475 = vmatpush3.msra.mxu1 %v2648_v42  ;;  %4476 = vmatprep.mubr.msk.f32.mxu1 %vm4749_vm1, %v4748_v34  ;;  %v4675_v59 = vpop.eup %4674 }
 0xe47   :  { %4484 = vmatprep.subr.mxu1 %v4748_v34  ;;  %v2826_v62 = vmul.f32 %v4675_v59, %v5329_v27  ;;  %4520 = vmatpush3.msra.mxu0 %v4128_v15  ;;  %v4139_v59 = vld [vmem:[%s5546_s11 + $0x30] sm:$0xff] }
 0xe48   :  { %v3319_v61 = vpop.xlane.xlu0 %3318  ;;  %4521 = vmatprep.subr.mxu0 %v4127_v16 }
 0xe49   :  { %4680 = vrcp.f32 %v3319_v61  ;;  %4477 = vmatmul.mubr.msk.f32.vlgmr.msra.gmra.mxu1 %vm222_vm2, %v2646_v58  ;;  %4522 = vmatpush3.msra.mxu0 %v4127_v16  ;;  %v4138_v61 = vld [vmem:[%s5546_s11 + $0x28] sm:$0xff] }
 0xe4a   :  { %4485 = vmatpush3.msra.mxu1 %v2828_v43  ;;  %4486 = vmatprep.mubr.msk.f32.mxu1 %vm4749_vm1, %v4748_v34  ;;  %v4130_v43 = vld [vmem:[%s5543_s8 + $0x1] ss:$0 sm:$0xff] }
 0xe4b   :  { %4494 = vmatprep.subr.mxu1 %v4748_v34  ;;  %4523 = vmatprep.subr.mxu0 %v4126_v19 }
 0xe4c   :  { %v3158_v12 = vpop.permute.xlu0 %3157  ;;  %4524 = vmatpush3.msra.mxu0 %v4126_v19  ;;  %v4151_v19 = vld [vmem:[%s5548_s13 + $0x70] sm:$0xff] }
 0xe4d   :  { %4487 = vmatmul.mubr.msk.f32.vlgmr.msra.gmra.mxu1 %vm222_vm2, %v2826_v62  ;;  %4525 = vmatprep.subr.mxu0 %v4125_v20  ;;  %v4137_v62 = vld [vmem:[%s5546_s11 + $0x20] sm:$0xff] }
 0xe4e   :  { %v4677_v63 = vpop.eup %4676  ;;  %4495 = vmatpush3.msra.mxu1 %v2993_v60  ;;  %4496 = vmatprep.mubr.msk.f32.mxu1 %vm4749_vm1, %v4748_v34 }
 0xe4f   :  { %4504 = vmatprep.subr.mxu1 %v4748_v34  ;;  %v2991_v0 = vmul.f32 %v4677_v63, %v4663_v37  ;;  %v4679_v1 = vpop.eup %4678  ;;  %4526 = vmatpush3.msra.mxu0 %v4125_v20  ;;  %v4150_v20 = vld [vmem:[%s5548_s13 + $0x68] sm:$0xff] }
 0xe50   :  { %v3156_v38 = vmul.f32 %v4679_v1, %v5333_v35 }
 0xe51   :  { %4497 = vmatmul.mubr.msk.f32.vlgmr.msra.gmra.mxu1 %vm222_vm2, %v2991_v0 }
 0xe52   :  { %4505 = vmatpush3.msra.mxu1 %v3158_v12  ;;  %4506 = vmatprep.mubr.msk.f32.mxu1 %vm4749_vm1, %v4748_v34 }
 0xe53   :  { %4514 = vmatprep.subr.mxu1 %v4748_v34 }
 0xe55   :  { %4507 = vmatmul.mubr.msk.f32.vlgmr.msra.gmra.mxu1 %vm222_vm2, %v3156_v38 }
 0xe56   :  { %v4681_v5 = vpop.eup %4680  ;;  %4515 = vmatpush3.msra.mxu1 %v3323_v4  ;;  %4516 = vmatprep.mubr.msk.f32.mxu1 %vm4749_vm1, %v4748_v34 }
 0xe57   :  { %v3321_v6 = vmul.f32 %v4681_v5, %v5338_v31 }
 0xe59   :  { %4517 = vmatmul.mubr.msk.f32.vlgmr.msra.gmra.mxu1 %vm222_vm2, %v3321_v6  ;;  %v4135_v6 = vld [vmem:[%s5544_s9 + $0x1] ss:$0 sm:$0xff] }
 0xed0   :  { %v2224_v8 = vpop.f32.mrf.mxu1 }
 0xed2   :  { %v4448_v10 = vpop.f32.mrf.mxu1 }
 0xed3   :  { %v4136_v10 = vld [vmem:[%s5545_s10 + $0x1] ss:$0 sm:$0xff] }
 0xed4   :  { %v2389_v11 = vpop.f32.mrf.mxu1 }
 0xed5   :  { %2724 = vrot.lane.b32.xlu0 %v2389_v11, %s4761_s29 }
 0xed6   :  { %v4458_v13 = vpop.f32.mrf.mxu1 }
 0xf05   :  { %v2554_v14 = vpop.f32.mrf.mxu1 }
 0xf06   :  { %2728 = vrot.lane.b32.xlu1 %v2554_v14, %s5599_s23 }
 0xf07   :  { %v4468_v17 = vpop.f32.mrf.mxu1 }
 0xf09   :  { %v2719_v18 = vpop.f32.mrf.mxu1 }
 0xf0a   :  { %2732 = vrot.lane.b32.xlu1 %v2719_v18, %s5600_s5  ;;  %v4152_v18 = vld [vmem:[%s5548_s13 + $0x78] sm:$0xff] }
 0xf0b   :  { %v4478_v21 = vpop.f32.mrf.mxu1  ;;  %4541 = vmatprep.subr.mxu0 %v4152_v18 }
 0xf0c   :  { %v4149_v21 = vld [vmem:[%s5548_s13 + $0x60] sm:$0xff] }
 0xf0d   :  { %v2899_v22 = vpop.f32.mrf.mxu1 }
 0xf0f   :  { %v4488_v40 = vpop.f32.mrf.mxu1 }
 0xf10   :  { %v4147_v40 = vld [vmem:[%s5548_s13 + $0x50] sm:$0xff] }
 0xf11   :  { %v3064_v23 = vpop.f32.mrf.mxu1 }
 0xf12   :  { %3399 = vrot.lane.b32.xlu0 %v3064_v23, %s4761_s29  ;;  %v4146_v23 = vld [vmem:[%s5548_s13 + $0x48] sm:$0xff] }
 0xf13   :  { %v4498_v24 = vpop.f32.mrf.mxu1 }
 0xf14   :  { %v4145_v24 = vld [vmem:[%s5548_s13 + $0x40] sm:$0xff] }
 0xf15   :  { %v3229_v25 = vpop.f32.mrf.mxu1 }
 0xf16   :  { %3403 = vrot.lane.b32.xlu0 %v3229_v25, %s5599_s23  ;;  %v4142_v25 = vld [vmem:[%s5547_s12 + $0x1] ss:$0 sm:$0xff]  ;;  %s5601_s12 = sld [smem:[#allocation10_spill]] }
 0xf17   :  { %v4508_v26 = vpop.f32.mrf.mxu1 }
 0xf19   :  { %v3394_v7 = vpop.f32.mrf.mxu1 }
 0xf1a   :  { %3407 = vrot.lane.b32.xlu1 %v3394_v7, %s5600_s5 }
 0xf1b   :  { %v4518_v27 = vpop.f32.mrf.mxu1 }
 0xf47   :  { %v2725_v28 = vpop.permute.xlu0 %2724 }
 0xf48   :  { %v2735_v30 = vsel %vm222_vm2, %v2224_v8, %v2725_v28 }
 0xf78   :  { %v2729_v29 = vpop.permute.xlu1 %2728 }
 0xf79   :  { %v2736_v32 = vsel %vm893_vm3, %v2735_v30, %v2729_v29 }
 0xf7c   :  { %v2733_v35 = vpop.permute.xlu1 %2732 }
 0xf7d   :  { %v2737_v36 = vsel %vm895_vm4, %v2736_v32, %v2733_v35 }
 0xf7e   :  { %4527 = vmatprep.mubr.msk.f32.mxu0 %vm76_vm0, %v2737_v36 }
 0xf84   :  { %v3400_v37 = vpop.permute.xlu0 %3399 }
 0xf85   :  { %v3410_v31 = vsel %vm222_vm2, %v2899_v22, %v3400_v37  ;;  %v4148_v22 = vld [vmem:[%s5548_s13 + $0x58] sm:$0xff] }
 0xf88   :  { %v3404_v33 = vpop.permute.xlu0 %3403 }
 0xf89   :  { %v3411_v39 = vsel %vm893_vm3, %v3410_v31, %v3404_v33 }
 0xf8c   :  { %v3408_v41 = vpop.permute.xlu1 %3407 }
 0xf8d   :  { %v3412_v42 = vsel %vm895_vm4, %v3411_v39, %v3408_v41 }
 0xf8e   :  { %4528 = vmatmul.mubr.msk.f32.vlgmr.msra.gmra.mxu0 %vm76_vm0, %v3412_v42 }
 0xf8f   :  { %4542 = vmatpush3.msra.mxu0 %v4152_v18 }
 0xf90   :  { %4543 = vmatprep.subr.mxu0 %v4151_v19 }
 0xf91   :  { %4544 = vmatpush3.msra.mxu0 %v4151_v19  ;;  %v4160_v19 = vld [vmem:[%s5551_s16 + $0x1] ss:$0 sm:$0xff] }
 0xf92   :  { %4545 = vmatprep.subr.mxu0 %v4150_v20 }
 0xf93   :  { %4546 = vmatpush3.msra.mxu0 %v4150_v20 }
 0xf94   :  { %4547 = vmatprep.subr.mxu0 %v4149_v21 }
 0xf95   :  { %4548 = vmatpush3.msra.mxu0 %v4149_v21 }
 0xf96   :  { %4549 = vmatprep.subr.mxu0 %v4148_v22 }
 0xf97   :  { %4550 = vmatpush3.msra.mxu0 %v4148_v22 }
 0xf98   :  { %4551 = vmatprep.subr.mxu0 %v4147_v40 }
 0xf99   :  { %4552 = vmatpush3.msra.mxu0 %v4147_v40 }
 0xf9a   :  { %4553 = vmatprep.subr.mxu0 %v4146_v23 }
 0xf9b   :  { %4554 = vmatpush3.msra.mxu0 %v4146_v23 }
 0xf9c   :  { %4555 = vmatprep.subr.mxu0 %v4145_v24 }
 0xf9d   :  { %4556 = vmatpush3.msra.mxu0 %v4145_v24 }
0x104e   :  { %v4529_v44 = vpop.f32.mrf.mxu0 }
0x104f   :  { %v3504_v45 = vadd.f32 %v4529_v44, %v4130_v43 }
0x1050   :  { %v3498_v46 = vpop.f32.mrf.mxu0 }
0x1051   :  { %v3508_v47 = vadd.f32 %v3504_v45, %v5210_v3  ;;  %v3499_v48 = vadd.f32 %v4130_v43, %v3498_v46 }
0x1053   :  { %v3507_v49 = vadd.f32 %v3499_v48, %v5208_v2  ;;  %v3516_v9 = vsel %vm76_vm0, %v3508_v47, 0.0  ;;  %v4140_v2 = vld [vmem:[%s5546_s11 + $0x38] sm:$0xff] }
0x1054   :  { %3517 = vadd.xlane.f32.xlu1 %v3516_v9  ;;  %4530 = vmatprep.subr.mxu1 %v4140_v2  ;;  %v4154_v9 = vld [vmem:[%s5549_s14 + $0x1] ss:$0 sm:$0xff] }
0x1055   :  { %v3513_v50 = vsel %vm76_vm0, %v3507_v49, 0.0  ;;  %4531 = vmatpush3.msra.mxu1 %v4140_v2 }
0x1056   :  { %3514 = vadd.xlane.f32.xlu0 %v3513_v50  ;;  %4532 = vmatprep.subr.mxu1 %v4139_v59 }
0x1057   :  { %4533 = vmatpush3.msra.mxu1 %v4139_v59 }
0x1058   :  { %4534 = vmatprep.subr.mxu1 %v4138_v61 }
0x1059   :  { %4535 = vmatpush3.msra.mxu1 %v4138_v61 }
0x105a   :  { %4536 = vmatprep.subr.mxu1 %v4137_v62 }
0x105b   :  { %4537 = vmatpush3.msra.mxu1 %v4137_v62 }
0x105c   :  { %4560 = vmatprep.subr.mxu1 %v4748_v34 }
0x10dd   :  { %v3518_v51 = vpop.xlane.xlu1 %3517 }
0x10de   :  { %v3520_v52 = vmul.f32 0.03125, %v3518_v51 }
0x10df   :  { %v3515_v60 = vpop.xlane.xlu0 %3514 }
0x10e0   :  { %v3519_v53 = vmul.f32 0.03125, %v3515_v60  ;;  %v3522_v54 = vsub.f32 %v3508_v47, %v3520_v52 }
0x10e2   :  { %v3521_v55 = vsub.f32 %v3507_v49, %v3519_v53  ;;  %v3524_v58 = vmul.f32 %v3522_v54, %v3522_v54 }
0x10e4   :  { %v3523_v56 = vmul.f32 %v3521_v55, %v3521_v55  ;;  %v3528_v3 = vsel %vm76_vm0, %v3524_v58, 0.0 }
0x10e6   :  { %v3525_v57 = vsel %vm76_vm0, %v3523_v56, 0.0 }
0x10e7   :  { %3526 = vadd.xlane.f32.xlu0 %v3525_v57 }
0x10eb   :  { %3529 = vadd.xlane.f32.xlu0 %v3528_v3 }
0x1170   :  { %v3527_v63 = vpop.xlane.xlu0 %3526 }
0x1171   :  { %v3531_v0 = vmul.f32 0.03125, %v3527_v63 }
0x1173   :  { %v3533_v1 = vadd.f32 1e-12, %v3531_v0 }
0x1174   :  { %v3530_v12 = vpop.xlane.xlu0 %3529 }
0x1175   :  { %4682 = vrsqrt.f32 %v3533_v1  ;;  %v3532_v38 = vmul.f32 0.03125, %v3530_v12  ;;  %v3821_v12 = vld [vmem:[%s5552_s17 + $0x18] sm:$0xff] }
0x1177   :  { %v3534_v4 = vadd.f32 1e-12, %v3532_v38  ;;  %v3820_v38 = vld [vmem:[%s5552_s17 + $0x10] sm:$0xff] }
0x1179   :  { %4684 = vrsqrt.f32 %v3534_v4  ;;  %v3819_v4 = vld [vmem:[%s5552_s17 + $0x8] sm:$0xff] }
0x1182   :  { %v4683_v5 = vpop.eup %4682 }
0x1183   :  { %v3537_v8 = vmul.f32 %v4683_v5, %v3521_v55  ;;  %v3818_v5 = vld [vmem:[%s5552_s17] sm:$0xff] }
0x1185   :  { %v3545_v11 = vmul.f32 %v4135_v6, %v3537_v8 }
0x1186   :  { %v4685_v13 = vpop.eup %4684 }
0x1187   :  { %v3538_v14 = vmul.f32 %v4685_v13, %v3522_v54  ;;  %v5433_v15 = vadd.f32 %v4136_v10, %v3545_v11 }
0x1189   :  { %v3546_v16 = vmul.f32 %v4135_v6, %v3538_v14  ;;  %4538 = vmatprep.mubr.msk.f32.mxu1 %vm76_vm0, %v5433_v15 }
0x118b   :  { %v3554_v17 = vadd.f32 %v4136_v10, %v3546_v16  ;;  %v4159_v16 = vld [vmem:[%s5550_s15 + $0x1] ss:$0 sm:$0xff] }
0x118d   :  { %4539 = vmatmul.mubr.msk.f32.vlgmr.msra.gmra.mxu1 %vm76_vm0, %v3554_v17 }
0x118e   :  { %4568 = vmatprep.mubr.msk.f32.mxu1 %vm4749_vm1, %v4748_v34  ;;  %4561 = vmatpush3.msra.mxu1 %v3821_v12 }
0x118f   :  { %4562 = vmatprep.subr.mxu1 %v4748_v34 }
0x1190   :  { %4563 = vmatpush3.msra.mxu1 %v3820_v38 }
0x1191   :  { %4564 = vmatprep.subr.mxu1 %v4748_v34 }
0x1192   :  { %4565 = vmatpush3.msra.mxu1 %v3819_v4 }
0x1193   :  { %4566 = vmatprep.subr.mxu1 %v4748_v34 }
0x1194   :  { %4567 = vmatpush3.msra.mxu1 %v3818_v5 }
0x1195   :  { %4571 = vmatprep.subr.mxu1 %v4748_v34 }
0x124d   :  { %v4540_v26 = vpop.f32.mrf.mxu1 }
0x124e   :  { %v3646_v7 = vadd.f32 %v4540_v26, %v4142_v25  ;;  %v3906_v26 = vld [vmem:[%s5554_s19 + $0x18] sm:$0xff] }
0x124f   :  { %v3640_v27 = vpop.f32.mrf.mxu1 }
0x1250   :  { %v3650_v28 = vmul.f32 %v3646_v7, %v3646_v7  ;;  %v3641_v29 = vadd.f32 %v4142_v25, %v3640_v27  ;;  %v3904_v27 = vld [vmem:[%s5554_s19 + $0x8] sm:$0xff] }
0x1252   :  { %v3652_v30 = vmul.f32 %v3650_v28, %v3646_v7  ;;  %v3649_v32 = vmul.f32 %v3641_v29, %v3641_v29  ;;  %v3903_v28 = vld [vmem:[%s5554_s19] sm:$0xff] }
0x1254   :  { %v3654_v35 = vmul.f32 0.044715, %v3652_v30  ;;  %v3651_v36 = vmul.f32 %v3649_v32, %v3641_v29 }
0x1256   :  { %v3656_v37 = vadd.f32 %v3654_v35, %v3646_v7  ;;  %v3653_v33 = vmul.f32 0.044715, %v3651_v36 }
0x1258   :  { %v3658_v31 = vmul.f32 0.7978846, %v3656_v37  ;;  %v3655_v39 = vadd.f32 %v3653_v33, %v3641_v29  ;;  %v4163_v37 = vld [vmem:[%s5555_s20] ss:$0 sm:$0xff]  ;;  %s4764_s20 = smov [#allocation2]  }
0x1259   :  { %s4029_s13 = sshll.u32 %s4764_s20, 4  ;;  %s4030_s13 = int_to_ptr.vmem [resolvable:$true] %s4029_s13 }
0x125a   :  { %4686 = vtanh.f32 %v3658_v31  ;;  %v3657_v41 = vmul.f32 0.7978846, %v3655_v39  ;;  %s4704_s14 = scalar_lea.vmem %s4030_s13, 32  ;;  %p4709_p1 = scmp.lt.s32.totalorder %s4030_s13, %s4030_s13 }
0x125b   :  { %p4705_p0 = scmp.ne.s32.totalorder %s4030_s13, %s4704_s14  ;;  %p4710_p2 = scmp.lt.s32.totalorder %s4704_s14, %s4704_s14 }
0x125c   :  { %4688 = vtanh.f32 %v3657_v41 }
0x125d   :  { %p4711_p3 = por %p4710_p2, %p4709_p1 }
0x125f   :  { %p4712_p4 = pnand %p4711_p3, %p4705_p0 }
0x1267   :  { %v4687_v42 = vpop.eup %4686 }
0x1268   :  { %v3662_v43 = vadd.f32 1.0, %v4687_v42 }
0x1269   :  { %v4689_v44 = vpop.eup %4688 }
0x126a   :  { %v3661_v45 = vadd.f32 1.0, %v4689_v44  ;;  %v3664_v46 = vmul.f32 0.5, %v3662_v43 }
0x126c   :  { %v3663_v47 = vmul.f32 0.5, %v3661_v45  ;;  %v3666_v49 = vmul.f32 %v3664_v46, %v3646_v7  ;;  %v3905_v7 = vld [vmem:[%s5554_s19 + $0x10] sm:$0xff]  ;;  %v3995_v46 = vld [vmem:[%s5601_s12] sm:$0x3] }
0x126e   :  { %v3665_v48 = vmul.f32 %v3663_v47, %v3641_v29  ;;  %v4161_v29 = vld [vmem:[%s5553_s18] ss:$0 sm:$0xff] }
0x1270   :  { %4557 = vmatprep.mubr.msk.f32.mxu0 %vm1839_vm5, %v3665_v48 }
0x1271   :  { %4558 = vmatmul.mubr.msk.f32.vlgmr.msra.gmra.mxu0 %vm1839_vm5, %v3666_v49 }
0x1331   :  { %v4559_v50 = vpop.f32.mrf.mxu0 }
0x1332   :  { %v3762_v51 = vadd.f32 %v4559_v50, %v4154_v9  ;;  %v4004_v50 = vsub.f32 1.0, %v3995_v46 }
0x1333   :  { %v3756_v52 = vpop.f32.mrf.mxu0 }
0x1334   :  { %v3766_v60 = vadd.f32 %v3762_v51, %v3554_v17  ;;  %v3757_v53 = vadd.f32 %v4154_v9, %v3756_v52 }
0x1336   :  { %v3765_v54 = vadd.f32 %v3757_v53, %v5433_v15  ;;  %v3774_v55 = vsel %vm76_vm0, %v3766_v60, 0.0 }
0x1337   :  { %3775 = vadd.xlane.f32.xlu0 %v3774_v55 }
0x1338   :  { %v3771_v56 = vsel %vm76_vm0, %v3765_v54, 0.0 }
0x1339   :  { %3772 = vadd.xlane.f32.xlu1 %v3771_v56 }
0x13c0   :  { %v3776_v57 = vpop.xlane.xlu0 %3775 }
0x13c1   :  { %v3778_v58 = vmul.f32 0.03125, %v3776_v57 }
0x13c2   :  { %v3773_v3 = vpop.xlane.xlu1 %3772 }
0x13c3   :  { %v3780_v2 = vsub.f32 %v3766_v60, %v3778_v58  ;;  %v3777_v59 = vmul.f32 0.03125, %v3773_v3 }
0x13c5   :  { %v3779_v61 = vsub.f32 %v3765_v54, %v3777_v59  ;;  %v3782_v62 = vmul.f32 %v3780_v2, %v3780_v2 }
0x13c7   :  { %v3786_v63 = vsel %vm76_vm0, %v3782_v62, 0.0  ;;  %v3781_v0 = vmul.f32 %v3779_v61, %v3779_v61 }
0x13c8   :  { %3787 = vadd.xlane.f32.xlu0 %v3786_v63 }
0x13c9   :  { %v3783_v1 = vsel %vm76_vm0, %v3781_v0, 0.0 }
0x13ca   :  { %3784 = vadd.xlane.f32.xlu1 %v3783_v1 }
0x1451   :  { %v3788_v6 = vpop.xlane.xlu0 %3787 }
0x1452   :  { %v3790_v8 = vmul.f32 0.03125, %v3788_v6 }
0x1453   :  { %v3785_v10 = vpop.xlane.xlu1 %3784 }
0x1454   :  { %v3792_v11 = vadd.f32 1e-12, %v3790_v8  ;;  %v3789_v13 = vmul.f32 0.03125, %v3785_v10 }
0x1456   :  { %4690 = vrsqrt.f32 %v3792_v11  ;;  %v3791_v14 = vadd.f32 1e-12, %v3789_v13 }
0x1458   :  { %4692 = vrsqrt.f32 %v3791_v14 }
0x1463   :  { %v4691_v15 = vpop.eup %4690 }
0x1464   :  { %v3796_v17 = vmul.f32 %v4691_v15, %v3780_v2 }
0x1465   :  { %v4693_v18 = vpop.eup %4692 }
0x1466   :  { %v3795_v20 = vmul.f32 %v4693_v18, %v3779_v61  ;;  %v3804_v21 = vmul.f32 %v4159_v16, %v3796_v17 }
0x1468   :  { %v3803_v22 = vmul.f32 %v4159_v16, %v3795_v20  ;;  %v3812_v40 = vadd.f32 %v4160_v19, %v3804_v21 }
0x146a   :  { %v3811_v23 = vadd.f32 %v4160_v19, %v3803_v22  ;;  %v3814_v24 = vrot.slane %v3812_v40, 7 }
0x146c   :  { %v3817_v25 = vsel %vm3816_vm6, %v3811_v23, %v3814_v24 }
0x146d   :  { %4569 = vmatmul.mubr.msk.f32.vlgmr.msra.gmra.mxu1 %vm76_vm0, %v3817_v25 }
0x146e   :  { %4579 = vmatprep.mubr.msk.f32.mxu1 %vm4749_vm1, %v4748_v34  ;;  %4572 = vmatpush3.msra.mxu1 %v3906_v26 }
0x146f   :  { %4573 = vmatprep.subr.mxu1 %v4748_v34 }
0x1470   :  { %4574 = vmatpush3.msra.mxu1 %v3905_v7 }
0x1471   :  { %4575 = vmatprep.subr.mxu1 %v4748_v34 }
0x1472   :  { %4576 = vmatpush3.msra.mxu1 %v3904_v27 }
0x1473   :  { %4577 = vmatprep.subr.mxu1 %v4748_v34 }
0x1474   :  { %4578 = vmatpush3.msra.mxu1 %v3903_v28 }
0x152d   :  { %v3898_v30 = vpop.f32.mrf.mxu1 }
0x152e   :  { %v3899_v32 = vadd.f32 %v4161_v29, %v3898_v30 }
0x152f   :  { %v4570_v35 = vpop.f32.mrf.mxu1 }
0x1530   :  { %4694 = vtanh.f32 %v3899_v32 }
0x153d   :  { %v4695_v36 = vpop.eup %4694 }
0x153e   :  { %4580 = vmatmul.mubr.msk.f32.vlgmr.msra.gmra.mxu1 %vm76_vm0, %v4695_v36 }
0x15fe   :  { %v3983_v33 = vpop.f32.mrf.mxu1 }
0x15ff   :  { %v3984_v31 = vadd.f32 %v4163_v37, %v3983_v33 }
0x1600   :  { %v4581_v39 = vpop.f32.mrf.mxu1 }
0x1601   :  { %v4165_v34 = vmul.f32 -1.442695, %v3984_v31 }
0x1603   :  { %4696 = vpow2.f32 %v4165_v34 }
0x1610   :  { %v4697_v41 = vpop.eup %4696 }
0x1611   :  { %v3990_v42 = vadd.f32 1.0, %v4697_v41 }
0x1613   :  { %4698 = vrcp.f32 %v3990_v42 }
0x1620   :  { %v4699_v43 = vpop.eup %4698 }
0x1621   :  { %4700 = vlog2.f32 %v4699_v43  ;;  %v3999_v44 = vsub.f32 1.0, %v4699_v43  ;;  %3994 = vst.msk [vmem:[#allocation2] sm:$0x3] %vm3993_vm7, %v4699_v43 }
0x1623   :  { %4702 = vlog2.f32 %v3999_v44 }
0x162e   :  { %v4701_v45 = vpop.eup %4700 }
0x162f   :  { %v3997_v47 = vmul.f32 0.6931472, %v4701_v45 }
0x1630   :  { %v4703_v48 = vpop.eup %4702 }
0x1631   :  { %v3998_v49 = vmax.f32 %v3997_v47, -100.0  ;;  %v4001_v9 = vmul.f32 0.6931472, %v4703_v48 }
0x1633   :  { %v4002_v51 = vmax.f32 %v4001_v9, -100.0  ;;  %v4003_v52 = vmul.f32 %v3998_v49, %v3995_v46 }
0x1635   :  { %v4005_v60 = vmul.f32 %v4004_v50, %v4002_v51 }
0x1637   :  { %v4006_v53 = vadd.f32 %v4005_v60, %v4003_v52 }
0x1639   :  { %v4007_v54 = vsub.f32 0.0, %v4006_v53 }
0x163b   :  { %v4008_v55 = vsel %vm3993_vm7, %v4007_v54, 0.0 }
0x163c   :  { %4009 = vadd.xlane.f32.xlu0 %v4008_v55 }
0x163d   :  { %4715 = shalt.err (!%p4712_p4)
}
0x163e   :  { %4032 = dma.vmem_to_hbm [thread:$0]  %s4030_s13, 32, %s5556_s21, [#allocation3]   ;;  %vm4021_vm8 = vcmask 0  }
0x163f   :  { %s4765_s9 = smov [#allocation4]  }
0x1640   :  { %s4039_s4 = sshll.u32 %s4765_s9, 4  ;;  %s4040_s4 = int_to_ptr.vmem [resolvable:$true] %s4039_s4 }
0x1641   :  { %s4724_s30 = scalar_lea.vmem %s4040_s4, 16  ;;  %s4728_s2 = scalar_lea.vmem %s4040_s4, 32 }
0x1642   :  { %p4725_p5 = scmp.ne.s32.totalorder %s4040_s4, %s4724_s30  ;;  %p4729_p6 = scmp.lt.s32.totalorder %s4040_s4, %s4040_s4 }
0x1643   :  { %p4730_p7 = scmp.lt.s32.totalorder %s4728_s2, %s4724_s30 }
0x1645   :  { %p4731_p8 = por %p4730_p7, %p4729_p6 }
0x1647   :  { %p4732_p9 = pnand %p4731_p8, %p4725_p5 }
0x16c5   :  { %v4010_v56 = vpop.xlane.xlu0 %4009 }
0x16c6   :  { %v4011_v57 = vrot.slane %v4010_v56, 4 }
0x16c8   :  { %v4012_v58 = vadd.f32 %v4011_v57, %v4010_v56 }
0x16ca   :  { %v4013_v3 = vrot.slane %v4012_v58, 2 }
0x16cc   :  { %v4014_v2 = vadd.f32 %v4013_v3, %v4012_v58 }
0x16ce   :  { %v4015_v59 = vrot.slane %v4014_v2, 1 }
0x16d0   :  { %v4016_v61 = vadd.f32 %v4015_v59, %v4014_v2 }
0x16d2   :  { %4582 = vpush %v4016_v61 }
0x1703   :  { %s4583_s10 = spop %4582 }
0x1704   :  { %v4018_v62 = vstv %s4583_s10 }
0x1705   :  { %v4020_v63 = vmul.f32 0.16666667, %v4018_v62 }
0x1707   :  { %4022 = vst.msk [vmem:[#allocation4] sm:$0x1] %vm4021_vm8, %v4020_v63 }
0x1708   :  { %4735 = shalt.err (!%p4732_p9)
}
0x1709   :  { %4042 = dma.vmem_to_hbm [thread:$0]  %s4040_s4, 16, %s5557_s22, [#allocation5]  }
0x170a   :  { %4744 = dma.done.wait [#allocation3], 32  }
0x170b   :  { %4745 = vsyncadd [#allocation3], 4294967264 }
0x170c   :  { %4746 = dma.done.wait [#allocation5], 16  }
0x170d   :  { %4747 = vsyncadd [#allocation5], 4294967280 }
0x170e   :  { %4049 = vsyncpa [#allocation3], 1 }
0x170f   :  { %4050 = vsyncpa [#allocation5], 1 }

</bundles_post_ra>
